<compile_context>
chip_gen: v6e
topology: v6e:2x2x1
jax: 0.10.0
libtpu: 0.0.40
codegen_flags: <defaults>
</compile_context>

<pallas_src>
import functools

import jax
import jax.numpy as jnp
from jax.experimental import pallas as pl
from jax.experimental.pallas import tpu as pltpu


# Set True on v6e/v7x to feed bf16 operands to the MXU (f32 accumulation kept).
# Left False by default to preserve exact f32 reference semantics.
USE_BF16_MXU = False


def _mxu_in(x):
    return x.astype(jnp.bfloat16) if USE_BF16_MXU else x


def _dot(a, b):
    return jnp.dot(_mxu_in(a), _mxu_in(b), preferred_element_type=jnp.float32)


# ----------------------------------------------------------------------------
# Fused forward kernel
# ----------------------------------------------------------------------------
def _graph_forward_kernel(
    x_ref, feat_ref, onehot_ref,
    w_all_ref, a_ref,
    fp_w1_ref, fp_b1_ref, fp_w2_ref, fp_b2_ref,
    lang_emb_ref,
    cl_w1_ref, cl_b1_ref, cl_w2_ref, cl_b2_ref,
    out_ref,
    *, alpha, threshold, n_heads, f_out, hidden_dim):
    x = x_ref[...]                                    # (N, Din)
    n = x.shape[0]

    # ---- adjacency from cosine similarity, fused in-kernel (kept f32) --------
    row_norm = jnp.sqrt(jnp.sum(x * x, axis=1, keepdims=True))
    xn = x / (row_norm + 1e-8)
    sim = jnp.dot(xn, xn.T, preferred_element_type=jnp.float32)      # (N, N)
    adj = sim > threshold
    # NOTE: the diagonal (self-similarity ~= 1) guarantees every row has at
    # least one unmasked entry for threshold < 1, so the softmax is well-posed.

    # ---- GAT: all heads' projection in one MXU call ---------------------------
    wh_all = _dot(x, w_all_ref[...])                  # (N, H*F) f32 accumulate
    a_all = a_ref[...]                                # (H, F, 2): [:, :, 0]=a1
    cl_w1 = cl_w1_ref[...]                            # (H*F + 2*hidden, hidden)

    # Classifier hidden accumulator: combined @ cl_w1 built piecewise (no concat,
    # head outputs never leave VMEM).
    h1 = jnp.zeros((n, hidden_dim), jnp.float32)

    for h in range(n_heads):                          # static unroll (H small)
        lo = h * f_out
        wh = wh_all[:, lo:lo + f_out]                 # tile-aligned static slice
        a_h = a_all[h]                                # (F, 2)
        # f[:, 0] = Wh . a1 (source term), f[:, 1] = Wh . a2 (dest term) -> MXU.
        f = jnp.dot(wh, a_h, preferred_element_type=jnp.float32)     # (N, 2)
        e = f[:, 0:1] + f[:, 1:2].T                   # (N, N)
        e = jnp.where(e > 0, e, alpha * e)            # LeakyReLU
        att = jnp.where(adj, e, jnp.float32(-9e15))
        att = att - jnp.max(att, axis=1, keepdims=True)
        p = jnp.exp(att)
        p = p / jnp.sum(p, axis=1, keepdims=True)     # row softmax
        h_prime = _dot(p, wh)                         # (N, F)
        # ELU with clamped dead branch (no inf / overflow on the positive side).
        head = jnp.where(h_prime > 0, h_prime,
                         jnp.exp(jnp.minimum(h_prime, 0.0)) - 1.0)
        h1 = h1 + _dot(head, cl_w1[lo:lo + f_out, :])

    # ---- feature_processor: Linear -> ReLU -> Linear --------------------------
    fh = jnp.maximum(_dot(feat_ref[...], fp_w1_ref[...]) + fp_b1_ref[...], 0.0)
    proc = _dot(fh, fp_w2_ref[...]) + fp_b2_ref[...]
    lo2 = n_heads * f_out
    h1 = h1 + _dot(proc, cl_w1[lo2:lo2 + hidden_dim, :])

    # ---- language embedding via one-hot matmul (gather-free) ------------------
    lang = _dot(onehot_ref[...], lang_emb_ref[...])   # (N, hidden)
    lo3 = lo2 + hidden_dim
    h1 = h1 + _dot(lang, cl_w1[lo3:lo3 + hidden_dim, :])

    # ---- classifier tail; lane-dense (padded) output store ---------------------
    h1 = jnp.maximum(h1 + cl_b1_ref[...], 0.0)
    out_ref[...] = _dot(h1, cl_w2_ref[...]) + cl_b2_ref[...]


# ----------------------------------------------------------------------------
# Parameter init (deterministic, mirrors module __init__ shapes)
# ----------------------------------------------------------------------------
def xavier_uniform(key, shape, gain=1.0):
    fan_in, fan_out = shape[-2], shape[-1]
    limit = gain * jnp.sqrt(6.0 / (fan_in + fan_out))
    return jax.random.uniform(key, shape, jnp.float32, -limit, limit)


def linear_init(key, fan_in, fan_out):
    kw, kb = jax.random.split(key)
    bound = 1.0 / jnp.sqrt(fan_in)
    w = jax.random.uniform(kw, (fan_in, fan_out), jnp.float32, -bound, bound)
    b = jax.random.uniform(kb, (1, fan_out), jnp.float32, -bound, bound)
    return w, b


def init_params(key, bert_hidden, hidden_dim, n_heads, feature_dim, num_classes,
                lane_pad=128):
    keys = jax.random.split(key, 8)
    params = {}
    # GAT: per-head W (bert_hidden, hidden) stored fused as (bert_hidden, H*hidden).
    w_stack = xavier_uniform(keys[0], (n_heads, bert_hidden, hidden_dim), gain=1.414)
    params["gat_w_all"] = jnp.transpose(w_stack, (1, 0, 2)).reshape(
        bert_hidden, n_heads * hidden_dim)
    # GAT: per-head a (2*hidden, 1) stored as (H, hidden, 2): [..., 0]=a1, [..., 1]=a2.
    a = xavier_uniform(keys[1], (n_heads, 2 * hidden_dim, 1), gain=1.414)
    params["gat_a"] = jnp.transpose(a.reshape(n_heads, 2, hidden_dim), (0, 2, 1))
    # feature_processor: Linear(feature_dim-1, hidden) -> ReLU -> Linear(hidden, hidden)
    params["fp_w1"], params["fp_b1"] = linear_init(keys[2], feature_dim - 1, hidden_dim)
    params["fp_w2"], params["fp_b2"] = linear_init(keys[3], hidden_dim, hidden_dim)
    # language_embedding: Embedding(7, hidden)
    params["lang_emb"] = jax.random.normal(keys[4], (7, hidden_dim), jnp.float32)
    # classifier: Linear(hidden*n_heads + 2*hidden, hidden) -> ReLU -> Linear(hidden, C)
    cls_in = hidden_dim * n_heads + hidden_dim * 2
    params["cl_w1"], params["cl_b1"] = linear_init(keys[5], cls_in, hidden_dim)
    w2, b2 = linear_init(keys[6], hidden_dim, num_classes)
    pad = (-num_classes) % lane_pad                  # lane-dense output slab
    params["cl_w2_pad"] = jnp.pad(w2, ((0, 0), (0, pad)))
    params["cl_b2_pad"] = jnp.pad(b2, ((0, 0), (0, pad)))
    return params


# ----------------------------------------------------------------------------
# Forward pass (thin glue + one pallas_call)
# ----------------------------------------------------------------------------
def graph_model_forward(params, cls_emb, features, *, num_classes,
                        alpha=0.2, sim_threshold=0.5):
    # TODO(synk): the BERT encoder + tokenizer decode have no Pallas equivalent;
    # `cls_emb` stands in for bert(...).last_hidden_state[:, 0, :].
    n, _ = cls_emb.shape
    n_heads, f_out, _ = params["gat_a"].shape
    hidden_dim = params["fp_w2"].shape[1]
    out_pad = params["cl_w2_pad"].shape[1]
    n_langs = params["lang_emb"].shape[0]

    feat = features[:, :-1]
    # TODO(synk): dynamic-index embedding gather has no clean in-kernel TPU
    # equivalent; the lookup is expressed as a one-hot (N, 7) MXU matmul.
    onehot = jax.nn.one_hot(features[:, -1].astype(jnp.int32), n_langs,
                            dtype=jnp.float32)

    kernel = functools.partial(
        _graph_forward_kernel,
        alpha=alpha, threshold=sim_threshold,
        n_heads=n_heads, f_out=f_out, hidden_dim=hidden_dim)

    vmem = pl.BlockSpec(memory_space=pltpu.MemorySpace.VMEM)
    # TODO(synk): for large graphs (N >~ 1500) row-tile the attention (grid over
    # query-row blocks + online softmax) to stay inside v7x's 64 MiB VMEM and to
    # expose a 'parallel' axis for its 2 TensorCores.
    logits_pad = pl.pallas_call(
        kernel,
        out_shape=jax.ShapeDtypeStruct((n, out_pad), jnp.float32),
        in_specs=[vmem] * 14,
        out_specs=vmem,
    )(cls_emb, feat, onehot,
      params["gat_w_all"], params["gat_a"],
      params["fp_w1"], params["fp_b1"], params["fp_w2"], params["fp_b2"],
      params["lang_emb"],
      params["cl_w1"], params["cl_b1"],
      params["cl_w2_pad"], params["cl_b2_pad"])

    return logits_pad[:, :num_classes]


# ----------------------------------------------------------------------------
if __name__ == "__main__":
    # Small, TPU-friendly shapes.
    N_NODES = 8          # "batch" of texts == graph nodes
    BERT_HIDDEN = 128    # stand-in for bert.config.hidden_size
    HIDDEN_DIM = 128
    N_HEADS = 2
    FEATURE_DIM = 7
    NUM_CLASSES = 2

    key = jax.random.PRNGKey(0)
    k_param, k_x, k_feat, k_lang = jax.random.split(key, 4)

    params = init_params(k_param, BERT_HIDDEN, HIDDEN_DIM, N_HEADS,
                         FEATURE_DIM, NUM_CLASSES)

    # Synthetic BERT CLS embeddings and numeric features.
    cls_emb = jax.random.normal(k_x, (N_NODES, BERT_HIDDEN), jnp.float32)
    feat_cont = jax.random.normal(k_feat, (N_NODES, FEATURE_DIM - 1), jnp.float32)
    lang_ids = jax.random.randint(k_lang, (N_NODES, 1), 0, 7).astype(jnp.float32)
    features = jnp.concatenate([feat_cont, lang_ids], axis=1)  # (N, 7)

    logits = graph_model_forward(params, cls_emb, features,
                                 num_classes=NUM_CLASSES)
    logits = jax.block_until_ready(logits)

    assert logits.shape == (N_NODES, NUM_CLASSES), logits.shape
    assert bool(jnp.all(jnp.isfinite(logits)))
    print("KERNEL_OK")
</pallas_src>

<mosaic_0001>
module attributes {stable_mosaic.version = 11 : i64} {
  func.func @_graph_forward_kernel(%arg0: memref<8x128xf32, #tpu.memory_space<vmem>>, %arg1: memref<8x6xf32, #tpu.memory_space<vmem>>, %arg2: memref<8x7xf32, #tpu.memory_space<vmem>>, %arg3: memref<128x256xf32, #tpu.memory_space<vmem>>, %arg4: memref<2x128x2xf32, #tpu.memory_space<vmem>>, %arg5: memref<6x128xf32, #tpu.memory_space<vmem>>, %arg6: memref<1x128xf32, #tpu.memory_space<vmem>>, %arg7: memref<128x128xf32, #tpu.memory_space<vmem>>, %arg8: memref<1x128xf32, #tpu.memory_space<vmem>>, %arg9: memref<7x128xf32, #tpu.memory_space<vmem>>, %arg10: memref<512x128xf32, #tpu.memory_space<vmem>>, %arg11: memref<1x128xf32, #tpu.memory_space<vmem>>, %arg12: memref<128x128xf32, #tpu.memory_space<vmem>>, %arg13: memref<1x128xf32, #tpu.memory_space<vmem>>, %arg14: memref<8x128xf32, #tpu.memory_space<vmem>>) attributes {dimension_semantics = [], scalar_prefetch = 0 : i64, scratch_operands = 0 : i64, tpu.core_type = #tpu.core_type<tc>} {
    %c0 = arith.constant 0 : index
    %c0_0 = arith.constant 0 : index
    %0 = vector.load %arg0[%c0, %c0_0] : memref<8x128xf32, #tpu.memory_space<vmem>>, vector<8x128xf32>
    %1 = arith.mulf %0, %0 : vector<8x128xf32>
    %cst = arith.constant dense<0.000000e+00> : vector<8xf32>
    %2 = vector.multi_reduction <add>, %1, %cst [1] : vector<8x128xf32> to vector<8xf32>
    %3 = vector.shape_cast %2 : vector<8xf32> to vector<8x1xf32>
    %4 = math.sqrt %3 : vector<8x1xf32>
    %cst_1 = arith.constant 9.99999993E-9 : f32
    %5 = vector.broadcast %cst_1 : f32 to vector<8x1xf32>
    %6 = arith.addf %4, %5 : vector<8x1xf32>
    %7 = vector.broadcast %6 : vector<8x1xf32> to vector<8x128xf32>
    %8 = arith.divf %0, %7 : vector<8x128xf32>
    %9 = tpu.transpose %8, [1, 0] : vector<8x128xf32> -> vector<128x8xf32>
    %cst_2 = arith.constant dense<0.000000e+00> : vector<8x8xf32>
    %10 = tpu.matmul %8, %9, %cst_2 {dimension_numbers = #tpu.dot_dimension_numbers<[1], [0], [0], [1], [0, 0, 1, 1], [], []>} : vector<8x128xf32>, vector<128x8xf32>, vector<8x8xf32> -> vector<8x8xf32>
    %cst_3 = arith.constant 5.000000e-01 : f32
    %11 = vector.broadcast %cst_3 : f32 to vector<8x8xf32>
    %12 = arith.cmpf ogt, %10, %11 : vector<8x8xf32>
    %c0_4 = arith.constant 0 : index
    %c0_5 = arith.constant 0 : index
    %13 = vector.load %arg3[%c0_4, %c0_5] : memref<128x256xf32, #tpu.memory_space<vmem>>, vector<128x256xf32>
    %cst_6 = arith.constant dense<0.000000e+00> : vector<8x256xf32>
    %14 = tpu.matmul %0, %13, %cst_6 {dimension_numbers = #tpu.dot_dimension_numbers<[1], [0], [0], [1], [0, 0, 1, 1], [], []>} : vector<8x128xf32>, vector<128x256xf32>, vector<8x256xf32> -> vector<8x256xf32>
    %c0_7 = arith.constant 0 : index
    %c0_8 = arith.constant 0 : index
    %c0_9 = arith.constant 0 : index
    %15 = vector.load %arg4[%c0_7, %c0_8, %c0_9] : memref<2x128x2xf32, #tpu.memory_space<vmem>>, vector<2x128x2xf32>
    %c0_10 = arith.constant 0 : index
    %c0_11 = arith.constant 0 : index
    %16 = vector.load %arg10[%c0_10, %c0_11] : memref<512x128xf32, #tpu.memory_space<vmem>>, vector<512x128xf32>
    %cst_12 = arith.constant 0.000000e+00 : f32
    %17 = vector.broadcast %cst_12 : f32 to vector<8x128xf32>
    %18 = vector.extract_strided_slice %14 {offsets = [0, 0], sizes = [8, 128], strides = [1, 1]} : vector<8x256xf32> to vector<8x128xf32>
    %19 = vector.extract_strided_slice %15 {offsets = [0, 0, 0], sizes = [1, 128, 2], strides = [1, 1, 1]} : vector<2x128x2xf32> to vector<1x128x2xf32>
    %20 = vector.shape_cast %19 : vector<1x128x2xf32> to vector<128x2xf32>
    %cst_13 = arith.constant dense<0.000000e+00> : vector<8x2xf32>
    %21 = tpu.matmul %18, %20, %cst_13 {dimension_numbers = #tpu.dot_dimension_numbers<[1], [0], [0], [1], [0, 0, 1, 1], [], []>} : vector<8x128xf32>, vector<128x2xf32>, vector<8x2xf32> -> vector<8x2xf32>
    %22 = vector.extract_strided_slice %21 {offsets = [0, 0], sizes = [8, 1], strides = [1, 1]} : vector<8x2xf32> to vector<8x1xf32>
    %23 = vector.extract_strided_slice %21 {offsets = [0, 1], sizes = [8, 1], strides = [1, 1]} : vector<8x2xf32> to vector<8x1xf32>
    %24 = tpu.transpose %23, [1, 0] : vector<8x1xf32> -> vector<1x8xf32>
    %25 = vector.broadcast %22 : vector<8x1xf32> to vector<8x8xf32>
    %26 = vector.broadcast %24 : vector<1x8xf32> to vector<8x8xf32>
    %27 = arith.addf %25, %26 : vector<8x8xf32>
    %cst_14 = arith.constant 0.000000e+00 : f32
    %28 = vector.broadcast %cst_14 : f32 to vector<8x8xf32>
    %29 = arith.cmpf ogt, %27, %28 : vector<8x8xf32>
    %cst_15 = arith.constant 2.000000e-01 : f32
    %30 = vector.broadcast %cst_15 : f32 to vector<8x8xf32>
    %31 = arith.mulf %30, %27 : vector<8x8xf32>
    %32 = arith.select %29, %27, %31 : vector<8x8xi1>, vector<8x8xf32>
    %cst_16 = arith.constant -9.000000e+15 : f32
    %33 = vector.broadcast %cst_16 : f32 to vector<8x8xf32>
    %34 = arith.select %12, %32, %33 : vector<8x8xi1>, vector<8x8xf32>
    %cst_17 = arith.constant dense<0xFF800000> : vector<8xf32>
    %35 = vector.multi_reduction <maximumf>, %34, %cst_17 [1] : vector<8x8xf32> to vector<8xf32>
    %36 = vector.shape_cast %35 : vector<8xf32> to vector<8x1xf32>
    %37 = vector.broadcast %36 : vector<8x1xf32> to vector<8x8xf32>
    %38 = arith.subf %34, %37 : vector<8x8xf32>
    %39 = math.exp %38 : vector<8x8xf32>
    %cst_18 = arith.constant dense<0.000000e+00> : vector<8xf32>
    %40 = vector.multi_reduction <add>, %39, %cst_18 [1] : vector<8x8xf32> to vector<8xf32>
    %41 = vector.shape_cast %40 : vector<8xf32> to vector<8x1xf32>
    %42 = vector.broadcast %41 : vector<8x1xf32> to vector<8x8xf32>
    %43 = arith.divf %39, %42 : vector<8x8xf32>
    %cst_19 = arith.constant dense<0.000000e+00> : vector<8x128xf32>
    %44 = tpu.matmul %43, %18, %cst_19 {dimension_numbers = #tpu.dot_dimension_numbers<[1], [0], [0], [1], [0, 0, 1, 1], [], []>} : vector<8x8xf32>, vector<8x128xf32>, vector<8x128xf32> -> vector<8x128xf32>
    %cst_20 = arith.constant 0.000000e+00 : f32
    %45 = vector.broadcast %cst_20 : f32 to vector<8x128xf32>
    %46 = arith.cmpf ogt, %44, %45 : vector<8x128xf32>
    %cst_21 = arith.constant 0.000000e+00 : f32
    %47 = vector.broadcast %cst_21 : f32 to vector<8x128xf32>
    %48 = arith.minimumf %44, %47 : vector<8x128xf32>
    %49 = math.exp %48 : vector<8x128xf32>
    %cst_22 = arith.constant 1.000000e+00 : f32
    %50 = vector.broadcast %cst_22 : f32 to vector<8x128xf32>
    %51 = arith.subf %49, %50 : vector<8x128xf32>
    %52 = arith.select %46, %44, %51 : vector<8x128xi1>, vector<8x128xf32>
    %53 = vector.extract_strided_slice %16 {offsets = [0, 0], sizes = [128, 128], strides = [1, 1]} : vector<512x128xf32> to vector<128x128xf32>
    %cst_23 = arith.constant dense<0.000000e+00> : vector<8x128xf32>
    %54 = tpu.matmul %52, %53, %cst_23 {dimension_numbers = #tpu.dot_dimension_numbers<[1], [0], [0], [1], [0, 0, 1, 1], [], []>} : vector<8x128xf32>, vector<128x128xf32>, vector<8x128xf32> -> vector<8x128xf32>
    %55 = arith.addf %17, %54 : vector<8x128xf32>
    %56 = vector.extract_strided_slice %14 {offsets = [0, 128], sizes = [8, 128], strides = [1, 1]} : vector<8x256xf32> to vector<8x128xf32>
    %57 = vector.extract_strided_slice %15 {offsets = [1, 0, 0], sizes = [1, 128, 2], strides = [1, 1, 1]} : vector<2x128x2xf32> to vector<1x128x2xf32>
    %58 = vector.shape_cast %57 : vector<1x128x2xf32> to vector<128x2xf32>
    %cst_24 = arith.constant dense<0.000000e+00> : vector<8x2xf32>
    %59 = tpu.matmul %56, %58, %cst_24 {dimension_numbers = #tpu.dot_dimension_numbers<[1], [0], [0], [1], [0, 0, 1, 1], [], []>} : vector<8x128xf32>, vector<128x2xf32>, vector<8x2xf32> -> vector<8x2xf32>
    %60 = vector.extract_strided_slice %59 {offsets = [0, 0], sizes = [8, 1], strides = [1, 1]} : vector<8x2xf32> to vector<8x1xf32>
    %61 = vector.extract_strided_slice %59 {offsets = [0, 1], sizes = [8, 1], strides = [1, 1]} : vector<8x2xf32> to vector<8x1xf32>
    %62 = tpu.transpose %61, [1, 0] : vector<8x1xf32> -> vector<1x8xf32>
    %63 = vector.broadcast %60 : vector<8x1xf32> to vector<8x8xf32>
    %64 = vector.broadcast %62 : vector<1x8xf32> to vector<8x8xf32>
    %65 = arith.addf %63, %64 : vector<8x8xf32>
    %cst_25 = arith.constant 0.000000e+00 : f32
    %66 = vector.broadcast %cst_25 : f32 to vector<8x8xf32>
    %67 = arith.cmpf ogt, %65, %66 : vector<8x8xf32>
    %cst_26 = arith.constant 2.000000e-01 : f32
    %68 = vector.broadcast %cst_26 : f32 to vector<8x8xf32>
    %69 = arith.mulf %68, %65 : vector<8x8xf32>
    %70 = arith.select %67, %65, %69 : vector<8x8xi1>, vector<8x8xf32>
    %cst_27 = arith.constant -9.000000e+15 : f32
    %71 = vector.broadcast %cst_27 : f32 to vector<8x8xf32>
    %72 = arith.select %12, %70, %71 : vector<8x8xi1>, vector<8x8xf32>
    %cst_28 = arith.constant dense<0xFF800000> : vector<8xf32>
    %73 = vector.multi_reduction <maximumf>, %72, %cst_28 [1] : vector<8x8xf32> to vector<8xf32>
    %74 = vector.shape_cast %73 : vector<8xf32> to vector<8x1xf32>
    %75 = vector.broadcast %74 : vector<8x1xf32> to vector<8x8xf32>
    %76 = arith.subf %72, %75 : vector<8x8xf32>
    %77 = math.exp %76 : vector<8x8xf32>
    %cst_29 = arith.constant dense<0.000000e+00> : vector<8xf32>
    %78 = vector.multi_reduction <add>, %77, %cst_29 [1] : vector<8x8xf32> to vector<8xf32>
    %79 = vector.shape_cast %78 : vector<8xf32> to vector<8x1xf32>
    %80 = vector.broadcast %79 : vector<8x1xf32> to vector<8x8xf32>
    %81 = arith.divf %77, %80 : vector<8x8xf32>
    %cst_30 = arith.constant dense<0.000000e+00> : vector<8x128xf32>
    %82 = tpu.matmul %81, %56, %cst_30 {dimension_numbers = #tpu.dot_dimension_numbers<[1], [0], [0], [1], [0, 0, 1, 1], [], []>} : vector<8x8xf32>, vector<8x128xf32>, vector<8x128xf32> -> vector<8x128xf32>
    %cst_31 = arith.constant 0.000000e+00 : f32
    %83 = vector.broadcast %cst_31 : f32 to vector<8x128xf32>
    %84 = arith.cmpf ogt, %82, %83 : vector<8x128xf32>
    %cst_32 = arith.constant 0.000000e+00 : f32
    %85 = vector.broadcast %cst_32 : f32 to vector<8x128xf32>
    %86 = arith.minimumf %82, %85 : vector<8x128xf32>
    %87 = math.exp %86 : vector<8x128xf32>
    %cst_33 = arith.constant 1.000000e+00 : f32
    %88 = vector.broadcast %cst_33 : f32 to vector<8x128xf32>
    %89 = arith.subf %87, %88 : vector<8x128xf32>
    %90 = arith.select %84, %82, %89 : vector<8x128xi1>, vector<8x128xf32>
    %91 = vector.extract_strided_slice %16 {offsets = [128, 0], sizes = [128, 128], strides = [1, 1]} : vector<512x128xf32> to vector<128x128xf32>
    %cst_34 = arith.constant dense<0.000000e+00> : vector<8x128xf32>
    %92 = tpu.matmul %90, %91, %cst_34 {dimension_numbers = #tpu.dot_dimension_numbers<[1], [0], [0], [1], [0, 0, 1, 1], [], []>} : vector<8x128xf32>, vector<128x128xf32>, vector<8x128xf32> -> vector<8x128xf32>
    %93 = arith.addf %55, %92 : vector<8x128xf32>
    %c0_35 = arith.constant 0 : index
    %c0_36 = arith.constant 0 : index
    %94 = vector.load %arg1[%c0_35, %c0_36] : memref<8x6xf32, #tpu.memory_space<vmem>>, vector<8x6xf32>
    %c0_37 = arith.constant 0 : index
    %c0_38 = arith.constant 0 : index
    %95 = vector.load %arg5[%c0_37, %c0_38] : memref<6x128xf32, #tpu.memory_space<vmem>>, vector<6x128xf32>
    %cst_39 = arith.constant dense<0.000000e+00> : vector<8x128xf32>
    %96 = tpu.matmul %94, %95, %cst_39 {dimension_numbers = #tpu.dot_dimension_numbers<[1], [0], [0], [1], [0, 0, 1, 1], [], []>} : vector<8x6xf32>, vector<6x128xf32>, vector<8x128xf32> -> vector<8x128xf32>
    %c0_40 = arith.constant 0 : index
    %c0_41 = arith.constant 0 : index
    %97 = vector.load %arg6[%c0_40, %c0_41] : memref<1x128xf32, #tpu.memory_space<vmem>>, vector<1x128xf32>
    %98 = vector.broadcast %97 : vector<1x128xf32> to vector<8x128xf32>
    %99 = arith.addf %96, %98 : vector<8x128xf32>
    %cst_42 = arith.constant 0.000000e+00 : f32
    %100 = vector.broadcast %cst_42 : f32 to vector<8x128xf32>
    %101 = arith.maximumf %99, %100 : vector<8x128xf32>
    %c0_43 = arith.constant 0 : index
    %c0_44 = arith.constant 0 : index
    %102 = vector.load %arg7[%c0_43, %c0_44] : memref<128x128xf32, #tpu.memory_space<vmem>>, vector<128x128xf32>
    %cst_45 = arith.constant dense<0.000000e+00> : vector<8x128xf32>
    %103 = tpu.matmul %101, %102, %cst_45 {dimension_numbers = #tpu.dot_dimension_numbers<[1], [0], [0], [1], [0, 0, 1, 1], [], []>} : vector<8x128xf32>, vector<128x128xf32>, vector<8x128xf32> -> vector<8x128xf32>
    %c0_46 = arith.constant 0 : index
    %c0_47 = arith.constant 0 : index
    %104 = vector.load %arg8[%c0_46, %c0_47] : memref<1x128xf32, #tpu.memory_space<vmem>>, vector<1x128xf32>
    %105 = vector.broadcast %104 : vector<1x128xf32> to vector<8x128xf32>
    %106 = arith.addf %103, %105 : vector<8x128xf32>
    %107 = vector.extract_strided_slice %16 {offsets = [256, 0], sizes = [128, 128], strides = [1, 1]} : vector<512x128xf32> to vector<128x128xf32>
    %cst_48 = arith.constant dense<0.000000e+00> : vector<8x128xf32>
    %108 = tpu.matmul %106, %107, %cst_48 {dimension_numbers = #tpu.dot_dimension_numbers<[1], [0], [0], [1], [0, 0, 1, 1], [], []>} : vector<8x128xf32>, vector<128x128xf32>, vector<8x128xf32> -> vector<8x128xf32>
    %109 = arith.addf %93, %108 : vector<8x128xf32>
    %c0_49 = arith.constant 0 : index
    %c0_50 = arith.constant 0 : index
    %110 = vector.load %arg2[%c0_49, %c0_50] : memref<8x7xf32, #tpu.memory_space<vmem>>, vector<8x7xf32>
    %c0_51 = arith.constant 0 : index
    %c0_52 = arith.constant 0 : index
    %111 = vector.load %arg9[%c0_51, %c0_52] : memref<7x128xf32, #tpu.memory_space<vmem>>, vector<7x128xf32>
    %cst_53 = arith.constant dense<0.000000e+00> : vector<8x128xf32>
    %112 = tpu.matmul %110, %111, %cst_53 {dimension_numbers = #tpu.dot_dimension_numbers<[1], [0], [0], [1], [0, 0, 1, 1], [], []>} : vector<8x7xf32>, vector<7x128xf32>, vector<8x128xf32> -> vector<8x128xf32>
    %113 = vector.extract_strided_slice %16 {offsets = [384, 0], sizes = [128, 128], strides = [1, 1]} : vector<512x128xf32> to vector<128x128xf32>
    %cst_54 = arith.constant dense<0.000000e+00> : vector<8x128xf32>
    %114 = tpu.matmul %112, %113, %cst_54 {dimension_numbers = #tpu.dot_dimension_numbers<[1], [0], [0], [1], [0, 0, 1, 1], [], []>} : vector<8x128xf32>, vector<128x128xf32>, vector<8x128xf32> -> vector<8x128xf32>
    %115 = arith.addf %109, %114 : vector<8x128xf32>
    %c0_55 = arith.constant 0 : index
    %c0_56 = arith.constant 0 : index
    %116 = vector.load %arg11[%c0_55, %c0_56] : memref<1x128xf32, #tpu.memory_space<vmem>>, vector<1x128xf32>
    %117 = vector.broadcast %116 : vector<1x128xf32> to vector<8x128xf32>
    %118 = arith.addf %115, %117 : vector<8x128xf32>
    %cst_57 = arith.constant 0.000000e+00 : f32
    %119 = vector.broadcast %cst_57 : f32 to vector<8x128xf32>
    %120 = arith.maximumf %118, %119 : vector<8x128xf32>
    %c0_58 = arith.constant 0 : index
    %c0_59 = arith.constant 0 : index
    %121 = vector.load %arg12[%c0_58, %c0_59] : memref<128x128xf32, #tpu.memory_space<vmem>>, vector<128x128xf32>
    %cst_60 = arith.constant dense<0.000000e+00> : vector<8x128xf32>
    %122 = tpu.matmul %120, %121, %cst_60 {dimension_numbers = #tpu.dot_dimension_numbers<[1], [0], [0], [1], [0, 0, 1, 1], [], []>} : vector<8x128xf32>, vector<128x128xf32>, vector<8x128xf32> -> vector<8x128xf32>
    %c0_61 = arith.constant 0 : index
    %c0_62 = arith.constant 0 : index
    %123 = vector.load %arg13[%c0_61, %c0_62] : memref<1x128xf32, #tpu.memory_space<vmem>>, vector<1x128xf32>
    %124 = vector.broadcast %123 : vector<1x128xf32> to vector<8x128xf32>
    %125 = arith.addf %122, %124 : vector<8x128xf32>
    %c0_63 = arith.constant 0 : index
    %c0_64 = arith.constant 0 : index
    %126 = vector.load %arg14[%c0_63, %c0_64] : memref<8x128xf32, #tpu.memory_space<vmem>>, vector<8x128xf32>
    tpu.vector_store %arg14[%c0_63, %c0_64], %125 {strides = array<i32>} : memref<8x128xf32, #tpu.memory_space<vmem>>, vector<8x128xf32>,
    return
  }
}

</mosaic_0001>

<bundles_post_ra>
// kernel: tpu_custom_call.1
= control target key start
LH: loop header
LB: loop body
LE: loop exit
PB: predicated region body
PF: predicated region fallthrough
CT: control target
= control target key end

     0   :  { %19 = vsyncpa [#allocation3], 0  ;;  %s2645_s0 = inlined_call_operand.vmem [shape: f32[8,128], index: 0, kind: input, shape index: {}]   ;;  %s2646_s1 = inlined_call_operand.hbm [shape: f32[8,6], index: 1, kind: input, shape index: {}]   ;;  %s2647_s2 = inlined_call_operand.hbm [shape: f32[8,7], index: 2, kind: input, shape index: {}]   ;;  %s2648_s3 = inlined_call_operand.vmem [shape: f32[128,256], index: 3, kind: input, shape index: {}]   ;;  %s2649_s4 = inlined_call_operand.vmem [shape: f32[2,128,2], index: 4, kind: input, shape index: {}]   ;;  %s2650_s5 = inlined_call_operand.hbm [shape: f32[6,128], index: 5, kind: input, shape index: {}]   ;;  %s2651_s6 = inlined_call_operand.vmem [shape: f32[1,128], index: 6, kind: input, shape index: {}]   ;;  %s2652_s7 = inlined_call_operand.hbm [shape: f32[128,128], index: 7, kind: input, shape index: {}]   ;;  %s2653_s8 = inlined_call_operand.vmem [shape: f32[1,128], index: 8, kind: input, shape index: {}]   ;;  %s2654_s9 = inlined_call_operand.vmem [shape: f32[7,128], index: 9, kind: input, shape index: {}]   ;;  %s2655_s10 = inlined_call_operand.hbm [shape: f32[512,128], index: 10, kind: input, shape index: {}]   ;;  %s2656_s11 = inlined_call_operand.vmem [shape: f32[1,128], index: 11, kind: input, shape index: {}]   ;;  %s2657_s12 = inlined_call_operand.hbm [shape: f32[128,128], index: 12, kind: input, shape index: {}]   ;;  %s2658_s13 = inlined_call_operand.vmem [shape: f32[1,128], index: 13, kind: input, shape index: {}]   ;;  %s2659_s14 = inlined_call_operand.hbm [shape: f32[8,128], index: 14, kind: output, shape index: {}]  }
   0x1   :  { %20 = vsyncpa [#allocation6], 0 }
   0x2   :  { %21 = vsyncpa [#allocation9], 0 }
   0x3   :  { %22 = vsyncpa [#allocation12], 0 }
   0x4   :  { %23 = vsyncpa [#allocation4], 0  ;;  %s2135_s29 = smov [#allocation5]   ;;  %s2136_s15 = smov [#allocation8]  }
   0x5   :  { %s42_s30 = sshll.u32 %s2135_s29, 4  ;;  %s67_s16 = sshll.u32 %s2136_s15, 4  ;;  %s43_s30 = int_to_ptr.vmem [resolvable:$true] %s42_s30  ;;  %s68_s16 = int_to_ptr.vmem [resolvable:$true] %s67_s16 }
   0x6   :  { %s1993_s17 = scalar_lea.vmem %s43_s30, 128  ;;  %p1998_p1 = scmp.lt.s32.totalorder %s43_s30, %s43_s30 }
   0x7   :  { %p1994_p0 = scmp.ne.s32.totalorder %s43_s30, %s1993_s17  ;;  %p1999_p2 = scmp.lt.s32.totalorder %s1993_s17, %s1993_s17 }
   0x9   :  { %p2000_p3 = por %p1999_p2, %p1998_p1 }
   0xb   :  { %p2001_p4 = pnand %p2000_p3, %p1994_p0 }
   0xd   :  { %2004 = shalt.err (!%p2001_p4)
}
   0xe   :  { %45 = dma.hbm_to_vmem [thread:$0]  %s2647_s2, 128, %s43_s30, [#allocation6]  }
   0xf   :  { %s2013_s20 = scalar_lea.vmem %s68_s16, 2048  ;;  %p2018_p6 = scmp.lt.s32.totalorder %s68_s16, %s68_s16 }
  0x10   :  { %p2014_p5 = scmp.ne.s32.totalorder %s68_s16, %s2013_s20  ;;  %p2019_p7 = scmp.lt.s32.totalorder %s2013_s20, %s2013_s20 }
  0x12   :  { %p2020_p8 = por %p2019_p7, %p2018_p6 }
  0x14   :  { %p2021_p9 = pnand %p2020_p8, %p2014_p5 }
  0x16   :  { %2024 = shalt.err (!%p2021_p9)
}
  0x17   :  { %s2137_s21 = smov 128   ;;  %s2138_s22 = smov 8  }
  0x18   :  { %73 = dma.hbm_to_vmem [thread:$0]  %s2652_s7, 2048, %s68_s16, [#allocation9], %s2137_s21, %s2137_s21, %s2138_s22  }
  0x19   :  { %s2139_s25 = smov [#allocation2]   ;;  %s2140_s27 = smov [#allocation7]  }
  0x1a   :  { %s32_s26 = sshll.u32 %s2139_s25, 4  ;;  %s56_s2 = sshll.u32 %s2140_s27, 4  ;;  %s33_s26 = int_to_ptr.vmem [resolvable:$true] %s32_s26  ;;  %s57_s2 = int_to_ptr.vmem [resolvable:$true] %s56_s2 }
  0x1b   :  { %s2033_s28 = scalar_lea.vmem %s33_s26, 128  ;;  %p2038_p11 = scmp.lt.s32.totalorder %s33_s26, %s33_s26 }
  0x1c   :  { %p2034_p10 = scmp.ne.s32.totalorder %s33_s26, %s2033_s28  ;;  %p2039_p12 = scmp.lt.s32.totalorder %s2033_s28, %s2033_s28 }
  0x1e   :  { %p2040_p13 = por %p2039_p12, %p2038_p11 }
  0x20   :  { %p2041_p0 = pnand %p2040_p13, %p2034_p10 }
  0x22   :  { %2044 = shalt.err (!%p2041_p0)
}
  0x23   :  { %35 = dma.hbm_to_vmem [thread:$0]  %s2646_s1, 128, %s33_s26, [#allocation3]  }
  0x24   :  { %s2053_s15 = scalar_lea.vmem %s57_s2, 128  ;;  %p2058_p2 = scmp.lt.s32.totalorder %s57_s2, %s57_s2 }
  0x25   :  { %p2054_p1 = scmp.ne.s32.totalorder %s57_s2, %s2053_s15  ;;  %p2059_p3 = scmp.lt.s32.totalorder %s2053_s15, %s2053_s15 }
  0x27   :  { %p2060_p4 = por %p2059_p3, %p2058_p2 }
  0x29   :  { %p2061_p5 = pnand %p2060_p4, %p2054_p1 }
  0x2b   :  { %2064 = shalt.err (!%p2061_p5)
}
  0x2c   :  { %59 = dma.hbm_to_vmem [thread:$0]  %s2650_s5, 128, %s57_s2, [#allocation6]  }
  0x2d   :  { %s2141_s17 = smov [#allocation10]   ;;  %s2142_s19 = smov [#allocation11]  }
  0x2e   :  { %s83_s18 = sshll.u32 %s2141_s17, 4  ;;  %s97_s20 = sshll.u32 %s2142_s19, 4  ;;  %s84_s18 = int_to_ptr.vmem [resolvable:$true] %s83_s18  ;;  %s98_s20 = int_to_ptr.vmem [resolvable:$true] %s97_s20 }
  0x2f   :  { %s2073_s23 = scalar_lea.vmem %s84_s18, 8192  ;;  %p2078_p7 = scmp.lt.s32.totalorder %s84_s18, %s84_s18 }
  0x30   :  { %p2074_p6 = scmp.ne.s32.totalorder %s84_s18, %s2073_s23  ;;  %p2079_p8 = scmp.lt.s32.totalorder %s2073_s23, %s2073_s23 }
  0x32   :  { %p2080_p9 = por %p2079_p8, %p2078_p7 }
  0x34   :  { %p2081_p10 = pnand %p2080_p9, %p2074_p6 }
  0x36   :  { %2084 = shalt.err (!%p2081_p10)
}
  0x37   :  { %89 = dma.hbm_to_vmem [thread:$0]  %s2655_s10, 8192, %s84_s18, [#allocation9], %s2137_s21, %s2137_s21, %s2138_s22  }
  0x38   :  { %s2093_s5 = scalar_lea.vmem %s98_s20, 2048  ;;  %p2098_p12 = scmp.lt.s32.totalorder %s98_s20, %s98_s20 }
  0x39   :  { %p2094_p11 = scmp.ne.s32.totalorder %s98_s20, %s2093_s5  ;;  %p2099_p13 = scmp.lt.s32.totalorder %s2093_s5, %s2093_s5 }
  0x3b   :  { %p2100_p0 = por %p2099_p13, %p2098_p12 }
  0x3d   :  { %p2101_p1 = pnand %p2100_p0, %p2094_p11 }
  0x3f   :  { %2104 = shalt.err (!%p2101_p1)
}
  0x40   :  { %103 = dma.hbm_to_vmem [thread:$0]  %s2657_s12, 2048, %s98_s20, [#allocation12], %s2137_s21, %s2137_s21, %s2138_s22  }
  0x41   :  { %2125 = dma.done.wait [#allocation3], 128  }
  0x42   :  { %2126 = vsyncadd [#allocation3], 4294967168 }
  0x43   :  { %2127 = dma.done.wait [#allocation6], 256  }
  0x44   :  { %2128 = vsyncadd [#allocation6], 4294967040 }
  0x45   :  { %2129 = dma.done.wait [#allocation9], 10240  }
  0x46   :  { %2130 = vsyncadd [#allocation9], 4294957056 }
  0x47   :  { %2131 = dma.done.wait [#allocation12], 2048  }
  0x48   :  { %2132 = vsyncadd [#allocation12], 4294965248  ;;  %v2253_v0 = vld [vmem:[%s2645_s0] sm:$0xff]  ;;  %v2143_v2 = vmov 0.0   ;;  %vm2144_vm0 = vmmov 0   ;;  %v240_v12 = vld [vmem:[%s2648_s3 + $0xf8] sm:$0xff] }
  0x49   :  { %v125_v1 = vmul.f32 %v2253_v0, %v2253_v0  ;;  %1649 = vmatprep.subr.mxu1 %v2143_v2  ;;  %1654 = vmatprep.subr.mxu0 %v2143_v2  ;;  %v239_v13 = vld [vmem:[%s2648_s3 + $0xf0] sm:$0xff]  ;;  %v238_v14 = vld [vmem:[%s2648_s3 + $0xe8] sm:$0xff]  ;;  %v237_v15 = vld [vmem:[%s2648_s3 + $0xe0] sm:$0xff]  ;;  %s2146_s16 = smov 127   ;;  %vm527_vm4 = vcmask 64512   ;;  %vm980_vm9 = vcmask 1045504  }
  0x4a   :  { %1651 = vmatprep.mubr.msk.f32.mxu1 %vm2144_vm0, %v2143_v2  ;;  %1686 = vmatprep.mubr.msk.f32.mxu0 %vm2144_vm0, %v2143_v2  ;;  %v236_v16 = vld [vmem:[%s2648_s3 + $0xd8] sm:$0xff]  ;;  %v235_v17 = vld [vmem:[%s2648_s3 + $0xd0] sm:$0xff]  ;;  %v234_v18 = vld [vmem:[%s2648_s3 + $0xc8] sm:$0xff]  ;;  %vm976_vm10 = vcmask 48128   ;;  %vm1225_vm11 = vcmask 1046528   ;;  %vm1221_vm12 = vcmask 56320  }
  0x4b   :  { %126 = vadd.xlane.f32.xlu0 %v125_v1  ;;  %v233_v19 = vld [vmem:[%s2648_s3 + $0xc0] sm:$0xff]  ;;  %v232_v20 = vld [vmem:[%s2648_s3 + $0xb8] sm:$0xff]  ;;  %v231_v21 = vld [vmem:[%s2648_s3 + $0xb0] sm:$0xff]  ;;  %s2147_s24 = smov [#allocation13]  }
  0x4c   :  { %v230_v22 = vld [vmem:[%s2648_s3 + $0xa8] sm:$0xff]  ;;  %v229_v23 = vld [vmem:[%s2648_s3 + $0xa0] sm:$0xff]  ;;  %v228_v24 = vld [vmem:[%s2648_s3 + $0x98] sm:$0xff]  ;;  %s1479_s5 = sshll.u32 %s2147_s24, 4  ;;  %s1480_s5 = int_to_ptr.vmem [resolvable:$true] %s1479_s5 }
  0x4d   :  { %v227_v25 = vld [vmem:[%s2648_s3 + $0x90] sm:$0xff]  ;;  %v226_v26 = vld [vmem:[%s2648_s3 + $0x88] sm:$0xff]  ;;  %v225_v27 = vld [vmem:[%s2648_s3 + $0x80] sm:$0xff]  ;;  %s2105_s25 = scalar_lea.vmem %s1480_s5, 128  ;;  %p2110_p3 = scmp.lt.s32.totalorder %s1480_s5, %s1480_s5 }
  0x4e   :  { %v224_v28 = vld [vmem:[%s2648_s3 + $0x78] sm:$0xff]  ;;  %v223_v29 = vld [vmem:[%s2648_s3 + $0x70] sm:$0xff]  ;;  %v222_v30 = vld [vmem:[%s2648_s3 + $0x68] sm:$0xff]  ;;  %p2106_p2 = scmp.ne.s32.totalorder %s1480_s5, %s2105_s25  ;;  %p2111_p4 = scmp.lt.s32.totalorder %s2105_s25, %s2105_s25 }
  0x4f   :  { %v221_v31 = vld [vmem:[%s2648_s3 + $0x60] sm:$0xff]  ;;  %v220_v32 = vld [vmem:[%s2648_s3 + $0x58] sm:$0xff]  ;;  %v219_v33 = vld [vmem:[%s2648_s3 + $0x50] sm:$0xff] }
  0x50   :  { %v218_v34 = vld [vmem:[%s2648_s3 + $0x48] sm:$0xff]  ;;  %v217_v35 = vld [vmem:[%s2648_s3 + $0x40] sm:$0xff]  ;;  %v216_v36 = vld [vmem:[%s2648_s3 + $0x38] sm:$0xff]  ;;  %p2112_p5 = por %p2111_p4, %p2110_p3 }
  0x51   :  { %v215_v37 = vld [vmem:[%s2648_s3 + $0x30] sm:$0xff]  ;;  %v214_v38 = vld [vmem:[%s2648_s3 + $0x28] sm:$0xff]  ;;  %v213_v39 = vld [vmem:[%s2648_s3 + $0x20] sm:$0xff] }
  0x52   :  { %v212_v40 = vld [vmem:[%s2648_s3 + $0x18] sm:$0xff]  ;;  %v211_v41 = vld [vmem:[%s2648_s3 + $0x10] sm:$0xff]  ;;  %v210_v42 = vld [vmem:[%s2648_s3 + $0x8] sm:$0xff]  ;;  %p2113_p6 = pnand %p2112_p5, %p2106_p2 }
  0x53   :  { %v209_v43 = vld [vmem:[%s2648_s3] sm:$0xff]  ;;  %v327_v44 = vld [vmem:[%s2649_s4 + $0x78] sm:$0xff]  ;;  %v326_v45 = vld [vmem:[%s2649_s4 + $0x70] sm:$0xff] }
  0x54   :  { %1655 = vmatpush3.msra.mxu0 %v327_v44  ;;  %v325_v46 = vld [vmem:[%s2649_s4 + $0x68] sm:$0xff]  ;;  %v324_v47 = vld [vmem:[%s2649_s4 + $0x60] sm:$0xff]  ;;  %v323_v48 = vld [vmem:[%s2649_s4 + $0x58] sm:$0xff] }
  0x55   :  { %1656 = vmatprep.subr.mxu0 %v2143_v2  ;;  %v322_v49 = vld [vmem:[%s2649_s4 + $0x50] sm:$0xff]  ;;  %v321_v50 = vld [vmem:[%s2649_s4 + $0x48] sm:$0xff]  ;;  %v320_v51 = vld [vmem:[%s2649_s4 + $0x40] sm:$0xff] }
  0x56   :  { %1657 = vmatpush3.msra.mxu0 %v326_v45  ;;  %v319_v52 = vld [vmem:[%s2649_s4 + $0x38] sm:$0xff]  ;;  %v318_v53 = vld [vmem:[%s2649_s4 + $0x30] sm:$0xff]  ;;  %v317_v54 = vld [vmem:[%s2649_s4 + $0x28] sm:$0xff] }
  0x57   :  { %1658 = vmatprep.subr.mxu0 %v2143_v2  ;;  %v316_v55 = vld [vmem:[%s2649_s4 + $0x20] sm:$0xff]  ;;  %v315_v56 = vld [vmem:[%s2649_s4 + $0x18] sm:$0xff]  ;;  %v314_v57 = vld [vmem:[%s2649_s4 + $0x10] sm:$0xff] }
  0x58   :  { %1659 = vmatpush3.msra.mxu0 %v325_v46  ;;  %v313_v58 = vld [vmem:[%s2649_s4 + $0x8] sm:$0xff]  ;;  %v312_v59 = vld [vmem:[%s2649_s4] sm:$0xff]  ;;  %v343_v62 = vld [vmem:[%s2649_s4 + $0xf8] sm:$0xff] }
  0x59   :  { %1660 = vmatprep.subr.mxu0 %v2143_v2  ;;  %v341_v1 = vld [vmem:[%s2649_s4 + $0xe8] sm:$0xff] }
  0x5a   :  { %1661 = vmatpush3.msra.mxu0 %v324_v47 }
  0x5b   :  { %1662 = vmatprep.subr.mxu0 %v2143_v2 }
  0x5c   :  { %1663 = vmatpush3.msra.mxu0 %v323_v48 }
  0x5d   :  { %1664 = vmatprep.subr.mxu0 %v2143_v2 }
  0x5e   :  { %1665 = vmatpush3.msra.mxu0 %v322_v49 }
  0x5f   :  { %1666 = vmatprep.subr.mxu0 %v2143_v2 }
  0x60   :  { %1667 = vmatpush3.msra.mxu0 %v321_v50 }
  0x61   :  { %1668 = vmatprep.subr.mxu0 %v2143_v2 }
  0x62   :  { %1669 = vmatpush3.msra.mxu0 %v320_v51 }
  0x63   :  { %1670 = vmatprep.subr.mxu0 %v2143_v2 }
  0x64   :  { %1671 = vmatpush3.msra.mxu0 %v319_v52 }
  0x65   :  { %1672 = vmatprep.subr.mxu0 %v2143_v2 }
  0x66   :  { %1673 = vmatpush3.msra.mxu0 %v318_v53  ;;  %v359_v53 = vld [vmem:[#allocation10 + $0x78] sm:$0xff] }
  0x67   :  { %1674 = vmatprep.subr.mxu0 %v2143_v2 }
  0x68   :  { %1675 = vmatpush3.msra.mxu0 %v317_v54  ;;  %v358_v54 = vld [vmem:[#allocation10 + $0x70] sm:$0xff] }
  0x69   :  { %1676 = vmatprep.subr.mxu0 %v2143_v2 }
  0x6a   :  { %1677 = vmatpush3.msra.mxu0 %v316_v55  ;;  %v357_v55 = vld [vmem:[#allocation10 + $0x68] sm:$0xff] }
  0x6b   :  { %1678 = vmatprep.subr.mxu0 %v2143_v2 }
  0x6c   :  { %1679 = vmatpush3.msra.mxu0 %v315_v56  ;;  %v356_v56 = vld [vmem:[#allocation10 + $0x60] sm:$0xff] }
  0x6d   :  { %1680 = vmatprep.subr.mxu0 %v2143_v2 }
  0x6e   :  { %1681 = vmatpush3.msra.mxu0 %v314_v57  ;;  %v355_v57 = vld [vmem:[#allocation10 + $0x58] sm:$0xff] }
  0x6f   :  { %1682 = vmatprep.subr.mxu0 %v2143_v2 }
  0x70   :  { %1683 = vmatpush3.msra.mxu0 %v313_v58 }
  0x71   :  { %1684 = vmatprep.subr.mxu0 %v2143_v2 }
  0x72   :  { %1685 = vmatpush3.msra.mxu0 %v312_v59 }
  0x73   :  { %1694 = vmatprep.subr.mxu0 %v2143_v2 }
  0xd4   :  { %v127_v3 = vpop.xlane.xlu0 %126 }
  0xd5   :  { %1969 = vrsqrt.f32 %v127_v3  ;;  %vm130_vm1 = vcmp.eq.f32.partialorder %v127_v3, inf  ;;  %v133_v6 = vand.u32 2147483648, %v127_v3  ;;  %vm132_vm2 = vcmp.eq.f32.partialorder %v127_v3, 0.0 }
  0xe2   :  { %v1970_v4 = vpop.eup %1969 }
  0xe3   :  { %v129_v5 = vmul.f32 %v1970_v4, %v127_v3  ;;  %v339_v4 = vld [vmem:[%s2649_s4 + $0xd8] sm:$0xff] }
  0xe5   :  { %v131_v7 = vsel %vm130_vm1, %v127_v3, %v129_v5  ;;  %v340_v3 = vld [vmem:[%s2649_s4 + $0xe0] sm:$0xff]  ;;  %v338_v5 = vld [vmem:[%s2649_s4 + $0xd0] sm:$0xff] }
  0xe6   :  { %v134_v8 = vsel %vm132_vm2, %v133_v6, %v131_v7  ;;  %v337_v6 = vld [vmem:[%s2649_s4 + $0xc8] sm:$0xff]  ;;  %v336_v7 = vld [vmem:[%s2649_s4 + $0xc0] sm:$0xff] }
  0xe7   :  { %v135_v9 = vadd.f32 1e-08, %v134_v8  ;;  %v335_v8 = vld [vmem:[%s2649_s4 + $0xb8] sm:$0xff] }
  0xe9   :  { %1971 = vrcp.f32 %v135_v9  ;;  %v334_v9 = vld [vmem:[%s2649_s4 + $0xb0] sm:$0xff] }
  0xf6   :  { %v1972_v10 = vpop.eup %1971 }
  0xf7   :  { %v137_v11 = vmul.f32 %v1972_v10, %v2253_v0  ;;  %v333_v10 = vld [vmem:[%s2649_s4 + $0xa8] sm:$0xff] }
  0xf9   :  { %1650 = vmatpush3.xpose.msra.mxu1 %v137_v11 }
  0xfa   :  { %241 = vmatprep.subr.mxu1 %v240_v12  ;;  %v331_v12 = vld [vmem:[%s2649_s4 + $0x98] sm:$0xff] }
  0xfc   :  { %1652 = vmatmul.mubr.f32.vlgmr.msra.gmra.mxu1 %v137_v11  ;;  %v332_v11 = vld [vmem:[%s2649_s4 + $0xa0] sm:$0xff] }
  0xfd   :  { %242 = vmatpush1.msra.mxu1 %v239_v13  ;;  %305 = vmatprep.mubr.f32.mxu1 %v2143_v2  ;;  %v330_v13 = vld [vmem:[%s2649_s4 + $0x90] sm:$0xff] }
  0xfe   :  { %243 = vmatprep.subr.mxu1 %v238_v14  ;;  %v329_v14 = vld [vmem:[%s2649_s4 + $0x88] sm:$0xff] }
  0xff   :  { %244 = vmatpush1.msra.mxu1 %v237_v15  ;;  %v328_v15 = vld [vmem:[%s2649_s4 + $0x80] sm:$0xff] }
 0x100   :  { %245 = vmatprep.subr.mxu1 %v236_v16 }
 0x101   :  { %246 = vmatpush1.msra.mxu1 %v235_v17  ;;  %v2145_v17 = vmov 0  }
 0x102   :  { %247 = vmatprep.subr.mxu1 %v234_v18  ;;  %1967 = vset.pattern.permute.xlu1 %v2145_v17 }
 0x103   :  { %248 = vmatpush1.msra.mxu1 %v233_v19 }
 0x104   :  { %249 = vmatprep.subr.mxu1 %v232_v20 }
 0x105   :  { %250 = vmatpush1.msra.mxu1 %v231_v21 }
 0x106   :  { %251 = vmatprep.subr.mxu1 %v230_v22 }
 0x107   :  { %252 = vmatpush1.msra.mxu1 %v229_v23 }
 0x108   :  { %253 = vmatprep.subr.mxu1 %v228_v24  ;;  %v518_v24 = vlaneseq }
 0x109   :  { %254 = vmatpush1.msra.mxu1 %v227_v25 }
 0x10a   :  { %255 = vmatprep.subr.mxu1 %v226_v26  ;;  %v519_v26 = vshrl.u32 %v518_v24, 7  ;;  %v363_v24 = vld [vmem:[#allocation10 + $0x98] sm:$0xff] }
 0x10b   :  { %256 = vmatpush1.msra.mxu1 %v225_v27 }
 0x10c   :  { %257 = vmatprep.subr.mxu1 %v224_v28  ;;  %v520_v28 = vsub.s32 0, %v519_v26  ;;  %v361_v26 = vld [vmem:[#allocation10 + $0x88] sm:$0xff] }
 0x10d   :  { %258 = vmatpush1.msra.mxu1 %v223_v29 }
 0x10e   :  { %259 = vmatprep.subr.mxu1 %v222_v30 }
 0x10f   :  { %260 = vmatpush1.msra.mxu1 %v221_v31 }
 0x110   :  { %261 = vmatprep.subr.mxu1 %v220_v32 }
 0x111   :  { %262 = vmatpush1.msra.mxu1 %v219_v33 }
 0x112   :  { %263 = vmatprep.subr.mxu1 %v218_v34 }
 0x113   :  { %264 = vmatpush1.msra.mxu1 %v217_v35 }
 0x114   :  { %265 = vmatprep.subr.mxu1 %v216_v36 }
 0x115   :  { %266 = vmatpush1.msra.mxu1 %v215_v37 }
 0x116   :  { %267 = vmatprep.subr.mxu1 %v214_v38 }
 0x117   :  { %268 = vmatpush1.msra.mxu1 %v213_v39 }
 0x118   :  { %269 = vmatprep.subr.mxu1 %v212_v40 }
 0x119   :  { %270 = vmatpush1.msra.mxu1 %v211_v41 }
 0x11a   :  { %271 = vmatprep.subr.mxu1 %v210_v42 }
 0x11b   :  { %272 = vmatpush1.msra.mxu1 %v209_v43 }
 0x11c   :  { %306 = vmatmul.mubr.f32.vlgmr.msra.gmra.mxu1 %v2253_v0  ;;  %1689 = vmatprep.subr.mxu1 %v2143_v2  ;;  %v342_v0 = vld [vmem:[%s2649_s4 + $0xf0] sm:$0xff] }
 0x11d   :  { %1691 = vmatprep.mubr.msk.f32.mxu1 %vm2144_vm0, %v2143_v2 }
 0x1bc   :  { %v2429_v60 = vpop.f32.mrf.mxu1 }
 0x1bd   :  { %vm208_vm5 = vcmp.gt.f32.partialorder %v2429_v60, 0.5 }
 0x1be   :  { %v1653_v61 = vpop.f32.mrf.mxu1 }
 0x1dc   :  { %v307_v63 = vpop.f32.mrf.mxu1 }
 0x1dd   :  { %1687 = vmatmul.mubr.f32.vlgmr.msra.gmra.mxu0 %v307_v63  ;;  %1690 = vmatpush3.msra.mxu1 %v307_v63 }
 0x1de   :  { %1695 = vmatpush3.msra.mxu0 %v343_v62  ;;  %1726 = vmatprep.mubr.msk.f32.mxu0 %vm2144_vm0, %v2143_v2  ;;  %v2497_v16 = vpop.f32.mrf.mxu1 }
 0x1df   :  { %1696 = vmatprep.subr.mxu0 %v2143_v2  ;;  %1729 = vmatprep.subr.mxu1 %v2143_v2 }
 0x1e0   :  { %1697 = vmatpush3.msra.mxu0 %v342_v0  ;;  %v354_v0 = vld [vmem:[#allocation10 + $0x50] sm:$0xff] }
 0x1e1   :  { %1698 = vmatprep.subr.mxu0 %v2143_v2 }
 0x1e2   :  { %1699 = vmatpush3.msra.mxu0 %v341_v1  ;;  %v353_v1 = vld [vmem:[#allocation10 + $0x48] sm:$0xff] }
 0x1e3   :  { %1700 = vmatprep.subr.mxu0 %v2143_v2 }
 0x1e4   :  { %1701 = vmatpush3.msra.mxu0 %v340_v3  ;;  %v352_v3 = vld [vmem:[#allocation10 + $0x40] sm:$0xff] }
 0x1e5   :  { %1702 = vmatprep.subr.mxu0 %v2143_v2 }
 0x1e6   :  { %1703 = vmatpush3.msra.mxu0 %v339_v4  ;;  %v351_v4 = vld [vmem:[#allocation10 + $0x38] sm:$0xff] }
 0x1e7   :  { %1704 = vmatprep.subr.mxu0 %v2143_v2 }
 0x1e8   :  { %1705 = vmatpush3.msra.mxu0 %v338_v5  ;;  %v350_v5 = vld [vmem:[#allocation10 + $0x30] sm:$0xff] }
 0x1e9   :  { %1706 = vmatprep.subr.mxu0 %v2143_v2 }
 0x1ea   :  { %1707 = vmatpush3.msra.mxu0 %v337_v6  ;;  %v375_v6 = vld [vmem:[#allocation10 + $0xf8] sm:$0xff] }
 0x1eb   :  { %1708 = vmatprep.subr.mxu0 %v2143_v2 }
 0x1ec   :  { %1709 = vmatpush3.msra.mxu0 %v336_v7  ;;  %v349_v7 = vld [vmem:[#allocation10 + $0x28] sm:$0xff] }
 0x1ed   :  { %1710 = vmatprep.subr.mxu0 %v2143_v2 }
 0x1ee   :  { %1711 = vmatpush3.msra.mxu0 %v335_v8  ;;  %v348_v8 = vld [vmem:[#allocation10 + $0x20] sm:$0xff] }
 0x1ef   :  { %1712 = vmatprep.subr.mxu0 %v2143_v2 }
 0x1f0   :  { %1713 = vmatpush3.msra.mxu0 %v334_v9  ;;  %v347_v9 = vld [vmem:[#allocation10 + $0x18] sm:$0xff] }
 0x1f1   :  { %1714 = vmatprep.subr.mxu0 %v2143_v2 }
 0x1f2   :  { %1715 = vmatpush3.msra.mxu0 %v333_v10  ;;  %v346_v10 = vld [vmem:[#allocation10 + $0x10] sm:$0xff] }
 0x1f3   :  { %1716 = vmatprep.subr.mxu0 %v2143_v2 }
 0x1f4   :  { %1717 = vmatpush3.msra.mxu0 %v332_v11  ;;  %v345_v11 = vld [vmem:[#allocation10 + $0x8] sm:$0xff] }
 0x1f5   :  { %1718 = vmatprep.subr.mxu0 %v2143_v2 }
 0x1f6   :  { %1719 = vmatpush3.msra.mxu0 %v331_v12  ;;  %v344_v12 = vld [vmem:[#allocation10] sm:$0xff] }
 0x1f7   :  { %1720 = vmatprep.subr.mxu0 %v2143_v2 }
 0x1f8   :  { %1721 = vmatpush3.msra.mxu0 %v330_v13  ;;  %v374_v13 = vld [vmem:[#allocation10 + $0xf0] sm:$0xff] }
 0x1f9   :  { %1722 = vmatprep.subr.mxu0 %v2143_v2 }
 0x1fa   :  { %1723 = vmatpush3.msra.mxu0 %v329_v14  ;;  %v373_v14 = vld [vmem:[#allocation10 + $0xe8] sm:$0xff] }
 0x1fb   :  { %1724 = vmatprep.subr.mxu0 %v2143_v2 }
 0x1fc   :  { %1725 = vmatpush3.msra.mxu0 %v328_v15  ;;  %v372_v15 = vld [vmem:[#allocation10 + $0xe0] sm:$0xff] }
 0x1fd   :  { %1727 = vmatmul.mubr.f32.vlgmr.msra.gmra.mxu0 %v2497_v16  ;;  %1769 = vmatprep.subr.mxu0 %v2143_v2 }
 0x1fe   :  { %1801 = vmatprep.mubr.msk.f32.mxu0 %vm2144_vm0, %v2143_v2  ;;  %1770 = vmatpush3.msra.mxu0 %v359_v53  ;;  %v1061_v53 = vld [vmem:[#allocation8 + $0x30] sm:$0xff] }
 0x1ff   :  { %1771 = vmatprep.subr.mxu0 %v2143_v2 }
 0x200   :  { %1772 = vmatpush3.msra.mxu0 %v358_v54  ;;  %v1060_v54 = vld [vmem:[#allocation8 + $0x28] sm:$0xff] }
 0x201   :  { %1773 = vmatprep.subr.mxu0 %v2143_v2 }
 0x202   :  { %1774 = vmatpush3.msra.mxu0 %v357_v55  ;;  %v1059_v55 = vld [vmem:[#allocation8 + $0x20] sm:$0xff] }
 0x203   :  { %1775 = vmatprep.subr.mxu0 %v2143_v2 }
 0x204   :  { %1776 = vmatpush3.msra.mxu0 %v356_v56  ;;  %v1058_v56 = vld [vmem:[#allocation8 + $0x18] sm:$0xff] }
 0x205   :  { %1777 = vmatprep.subr.mxu0 %v2143_v2 }
 0x206   :  { %1778 = vmatpush3.msra.mxu0 %v355_v57  ;;  %v1057_v57 = vld [vmem:[#allocation8 + $0x10] sm:$0xff] }
 0x207   :  { %1779 = vmatprep.subr.mxu0 %v2143_v2 }
 0x208   :  { %1780 = vmatpush3.msra.mxu0 %v354_v0  ;;  %v387_v0 = vld [vmem:[#allocation10 + $0x158] sm:$0xff] }
 0x209   :  { %1781 = vmatprep.subr.mxu0 %v2143_v2 }
 0x20a   :  { %1782 = vmatpush3.msra.mxu0 %v353_v1  ;;  %v386_v1 = vld [vmem:[#allocation10 + $0x150] sm:$0xff] }
 0x20b   :  { %1783 = vmatprep.subr.mxu0 %v2143_v2 }
 0x20c   :  { %1784 = vmatpush3.msra.mxu0 %v352_v3  ;;  %v385_v3 = vld [vmem:[#allocation10 + $0x148] sm:$0xff] }
 0x20d   :  { %1785 = vmatprep.subr.mxu0 %v2143_v2 }
 0x20e   :  { %1786 = vmatpush3.msra.mxu0 %v351_v4  ;;  %v384_v4 = vld [vmem:[#allocation10 + $0x140] sm:$0xff] }
 0x20f   :  { %1787 = vmatprep.subr.mxu0 %v2143_v2 }
 0x210   :  { %1788 = vmatpush3.msra.mxu0 %v350_v5  ;;  %v383_v5 = vld [vmem:[#allocation10 + $0x138] sm:$0xff] }
 0x211   :  { %1789 = vmatprep.subr.mxu0 %v2143_v2 }
 0x212   :  { %1790 = vmatpush3.msra.mxu0 %v349_v7  ;;  %v381_v7 = vld [vmem:[#allocation10 + $0x128] sm:$0xff] }
 0x213   :  { %1791 = vmatprep.subr.mxu0 %v2143_v2 }
 0x214   :  { %1792 = vmatpush3.msra.mxu0 %v348_v8  ;;  %v380_v8 = vld [vmem:[#allocation10 + $0x120] sm:$0xff] }
 0x215   :  { %1793 = vmatprep.subr.mxu0 %v2143_v2 }
 0x216   :  { %1794 = vmatpush3.msra.mxu0 %v347_v9  ;;  %v379_v9 = vld [vmem:[#allocation10 + $0x118] sm:$0xff] }
 0x217   :  { %1795 = vmatprep.subr.mxu0 %v2143_v2 }
 0x218   :  { %1796 = vmatpush3.msra.mxu0 %v346_v10  ;;  %v378_v10 = vld [vmem:[#allocation10 + $0x110] sm:$0xff] }
 0x219   :  { %1797 = vmatprep.subr.mxu0 %v2143_v2 }
 0x21a   :  { %1798 = vmatpush3.msra.mxu0 %v345_v11 }
 0x21b   :  { %1799 = vmatprep.subr.mxu0 %v2143_v2 }
 0x21c   :  { %1800 = vmatpush3.msra.mxu0 %v344_v12 }
 0x21d   :  { %1844 = vmatprep.subr.mxu0 %v2143_v2 }
 0x29d   :  { %v474_v18 = vpop.f32.mrf.mxu0 }
 0x29e   :  { %479 = vrot.lane.b32.xlu0 %v474_v18, %s2146_s16 }
 0x29f   :  { %v1688_v19 = vpop.f32.mrf.mxu0 }
 0x2a0   :  { %v368_v19 = vld [vmem:[#allocation10 + $0xc0] sm:$0xff] }
 0x2bd   :  { %v684_v20 = vpop.f32.mrf.mxu0 }
 0x2be   :  { %689 = vrot.lane.b32.xlu1 %v684_v20, %s2146_s16 }
 0x2bf   :  { %v1728_v21 = vpop.f32.mrf.mxu0 }
 0x2c0   :  { %v366_v21 = vld [vmem:[#allocation10 + $0xb0] sm:$0xff] }
 0x2c2   :  { %515 = vperm.xlu1 %1967, %v474_v18   ;;  %v369_v18 = vld [vmem:[#allocation10 + $0xc8] sm:$0xff] }
 0x2c6   :  { %725 = vperm.xlu1 %1967, %v684_v20   ;;  %v367_v20 = vld [vmem:[#allocation10 + $0xb8] sm:$0xff] }
 0x310   :  { %v480_v22 = vpop.permute.xlu0 %479 }
 0x311   :  { %482 = vxpose.xlu1.b32.start.end [1/1] (short) (narrow) %v480_v22, 8  ;;  %v365_v22 = vld [vmem:[#allocation10 + $0xa8] sm:$0xff] }
 0x330   :  { %v690_v23 = vpop.permute.xlu1 %689 }
 0x331   :  { %692 = vxpose.xlu0.b32.start.end [1/1] (short) (narrow) %v690_v23, 8  ;;  %v364_v23 = vld [vmem:[#allocation10 + $0xa0] sm:$0xff] }
 0x33d   :  { %v516_v25 = vpop.permute.xlu1 %515 }
 0x341   :  { %v726_v27 = vpop.permute.xlu1 %725 }
 0x35a   :  { %1968 = vset.pattern.permute.xlu0 %v2145_v17  ;;  %v370_v17 = vld [vmem:[#allocation10 + $0xd0] sm:$0xff] }
 0x38d   :  { %v498_v29 = vpop.trf.xlu1 }
 0x38e   :  { %v521_v30 = vrot.slane %v498_v29, %v520_v28 }
 0x390   :  { %v522_v31 = vadd.f32 %v521_v30, %v516_v25  ;;  %v362_v25 = vld [vmem:[#allocation10 + $0x90] sm:$0xff] }
 0x392   :  { %vm523_vm3 = vcmp.gt.f32.partialorder %v522_v31, 0.0  ;;  %v524_v32 = vmul.f32 0.2, %v522_v31 }
 0x394   :  { %v525_v33 = vsel %vm523_vm3, %v522_v31, %v524_v32 }
 0x395   :  { %v526_v34 = vsel %vm208_vm5, %v525_v33, -9e+15 }
 0x396   :  { %v528_v35 = vsel %vm527_vm4, %v526_v34, -inf }
 0x397   :  { %529 = vmax.xlane.f32.xlu1 %v528_v35 }
 0x3ad   :  { %v708_v36 = vpop.trf.xlu0 }
 0x3ae   :  { %v731_v37 = vrot.slane %v708_v36, %v520_v28 }
 0x3b0   :  { %v732_v38 = vadd.f32 %v731_v37, %v726_v27  ;;  %v360_v27 = vld [vmem:[#allocation10 + $0x80] sm:$0xff] }
 0x3b2   :  { %vm733_vm6 = vcmp.gt.f32.partialorder %v732_v38, 0.0  ;;  %v734_v39 = vmul.f32 0.2, %v732_v38 }
 0x3b4   :  { %v735_v40 = vsel %vm733_vm6, %v732_v38, %v734_v39 }
 0x3b5   :  { %v736_v41 = vsel %vm208_vm5, %v735_v40, -9e+15 }
 0x3b6   :  { %v737_v42 = vsel %vm527_vm4, %v736_v41, -inf }
 0x3b7   :  { %738 = vmax.xlane.f32.xlu0 %v737_v42 }
 0x420   :  { %v530_v43 = vpop.xlane.xlu1 %529 }
 0x421   :  { %v531_v44 = vsub.f32 %v526_v34, %v530_v43  ;;  %v967_v43 = vld [vmem:[#allocation2] sm:$0xff] }
 0x423   :  { %v532_v45 = vmul.f32 1.442695, %v531_v44  ;;  %v1070_v44 = vld [vmem:[#allocation8 + $0x78] sm:$0xff] }
 0x425   :  { %1973 = vpow2.f32 %v532_v45  ;;  %v1069_v45 = vld [vmem:[#allocation8 + $0x70] sm:$0xff] }
 0x432   :  { %v1974_v46 = vpop.eup %1973 }
 0x433   :  { %v534_v47 = vsel %vm527_vm4, %v1974_v46, 0.0 }
 0x434   :  { %535 = vadd.xlane.f32.xlu1 %v534_v47  ;;  %v1067_v47 = vld [vmem:[#allocation8 + $0x60] sm:$0xff] }
 0x440   :  { %v739_v48 = vpop.xlane.xlu0 %738 }
 0x441   :  { %v740_v49 = vsub.f32 %v736_v41, %v739_v48  ;;  %v968_v41 = vld [vmem:[#allocation7] sm:$0x3f] }
 0x442   :  { %v1066_v48 = vld [vmem:[#allocation8 + $0x58] sm:$0xff] }
 0x443   :  { %v741_v50 = vmul.f32 1.442695, %v740_v49  ;;  %v1065_v49 = vld [vmem:[#allocation8 + $0x50] sm:$0xff] }
 0x445   :  { %1975 = vpow2.f32 %v741_v50  ;;  %v1064_v50 = vld [vmem:[#allocation8 + $0x48] sm:$0xff] }
 0x452   :  { %v1976_v51 = vpop.eup %1975 }
 0x453   :  { %v743_v52 = vsel %vm527_vm4, %v1976_v51, 0.0 }
 0x454   :  { %744 = vadd.xlane.f32.xlu1 %v743_v52  ;;  %v1062_v52 = vld [vmem:[#allocation8 + $0x38] sm:$0xff] }
 0x4bd   :  { %v536_v58 = vpop.xlane.xlu1 %535 }
 0x4be   :  { %1977 = vrcp.f32 %v536_v58  ;;  %v1056_v58 = vld [vmem:[#allocation8 + $0x8] sm:$0xff] }
 0x4cb   :  { %v1978_v59 = vpop.eup %1977 }
 0x4cc   :  { %v538_v60 = vmul.f32 %v1978_v59, %v1974_v46  ;;  %v1068_v46 = vld [vmem:[#allocation8 + $0x68] sm:$0xff]  ;;  %v1055_v59 = vld [vmem:[#allocation8] sm:$0xff] }
 0x4ce   :  { %1692 = vmatmul.mubr.msk.f32.vlgmr.msra.gmra.mxu1 %vm527_vm4, %v538_v60  ;;  %v391_v60 = vld [vmem:[#allocation10 + $0x178] sm:$0xff] }
 0x4cf   :  { %1730 = vmatpush3.msra.mxu1 %v2497_v16  ;;  %1731 = vmatprep.mubr.msk.f32.mxu1 %vm2144_vm0, %v2143_v2  ;;  %v371_v16 = vld [vmem:[#allocation10 + $0xd8] sm:$0xff] }
 0x4d0   :  { %1734 = vmatprep.subr.mxu1 %v2143_v2 }
 0x4dd   :  { %v745_v61 = vpop.xlane.xlu1 %744 }
 0x4de   :  { %1979 = vrcp.f32 %v745_v61  ;;  %v390_v61 = vld [vmem:[#allocation10 + $0x170] sm:$0xff] }
 0x4eb   :  { %v1980_v62 = vpop.eup %1979 }
 0x4ec   :  { %v747_v63 = vmul.f32 %v1980_v62, %v1976_v51  ;;  %v1063_v51 = vld [vmem:[#allocation8 + $0x40] sm:$0xff]  ;;  %v389_v62 = vld [vmem:[#allocation10 + $0x168] sm:$0xff] }
 0x4ee   :  { %1732 = vmatmul.mubr.msk.f32.vlgmr.msra.gmra.mxu1 %vm527_vm4, %v747_v63  ;;  %v388_v63 = vld [vmem:[#allocation10 + $0x160] sm:$0xff] }
 0x4ef   :  { %1766 = vmatprep.mubr.msk.f32.mxu1 %vm2144_vm0, %v2143_v2  ;;  %1735 = vmatpush3.msra.mxu1 %v375_v6  ;;  %v382_v6 = vld [vmem:[#allocation10 + $0x130] sm:$0xff] }
 0x4f0   :  { %1736 = vmatprep.subr.mxu1 %v2143_v2 }
 0x4f1   :  { %1737 = vmatpush3.msra.mxu1 %v374_v13 }
 0x4f2   :  { %1738 = vmatprep.subr.mxu1 %v2143_v2 }
 0x4f3   :  { %1739 = vmatpush3.msra.mxu1 %v373_v14 }
 0x4f4   :  { %1740 = vmatprep.subr.mxu1 %v2143_v2 }
 0x4f5   :  { %1741 = vmatpush3.msra.mxu1 %v372_v15 }
 0x4f6   :  { %1742 = vmatprep.subr.mxu1 %v2143_v2 }
 0x4f7   :  { %1743 = vmatpush3.msra.mxu1 %v371_v16  ;;  %v1495_v16 = vld [vmem:[%s2651_s6] ss:$0 sm:$0xff] }
 0x4f8   :  { %1744 = vmatprep.subr.mxu1 %v2143_v2 }
 0x4f9   :  { %1745 = vmatpush3.msra.mxu1 %v370_v17 }
 0x4fa   :  { %1746 = vmatprep.subr.mxu1 %v2143_v2 }
 0x4fb   :  { %1747 = vmatpush3.msra.mxu1 %v369_v18 }
 0x4fc   :  { %1748 = vmatprep.subr.mxu1 %v2143_v2 }
 0x4fd   :  { %1749 = vmatpush3.msra.mxu1 %v368_v19 }
 0x4fe   :  { %1750 = vmatprep.subr.mxu1 %v2143_v2 }
 0x4ff   :  { %1751 = vmatpush3.msra.mxu1 %v367_v20 }
 0x500   :  { %1752 = vmatprep.subr.mxu1 %v2143_v2 }
 0x501   :  { %1753 = vmatpush3.msra.mxu1 %v366_v21  ;;  %v1220_v21 = vld [vmem:[%s2654_s9] sm:$0x7f] }
 0x502   :  { %1754 = vmatprep.subr.mxu1 %v2143_v2 }
 0x503   :  { %1755 = vmatpush3.msra.mxu1 %v365_v22  ;;  %v1219_v22 = vld [vmem:[#allocation5] sm:$0xff] }
 0x504   :  { %1756 = vmatprep.subr.mxu1 %v2143_v2 }
 0x505   :  { %1757 = vmatpush3.msra.mxu1 %v364_v23  ;;  %v407_v23 = vld [vmem:[#allocation10 + $0x1f8] sm:$0xff] }
 0x506   :  { %1758 = vmatprep.subr.mxu1 %v2143_v2 }
 0x507   :  { %1759 = vmatpush3.msra.mxu1 %v363_v24  ;;  %v406_v24 = vld [vmem:[#allocation10 + $0x1f0] sm:$0xff] }
 0x508   :  { %1760 = vmatprep.subr.mxu1 %v2143_v2 }
 0x509   :  { %1761 = vmatpush3.msra.mxu1 %v362_v25  ;;  %v405_v25 = vld [vmem:[#allocation10 + $0x1e8] sm:$0xff] }
 0x50a   :  { %1762 = vmatprep.subr.mxu1 %v2143_v2 }
 0x50b   :  { %1763 = vmatpush3.msra.mxu1 %v361_v26  ;;  %v404_v26 = vld [vmem:[#allocation10 + $0x1e0] sm:$0xff] }
 0x50c   :  { %1764 = vmatprep.subr.mxu1 %v2143_v2 }
 0x50d   :  { %1765 = vmatpush3.msra.mxu1 %v360_v27  ;;  %v403_v27 = vld [vmem:[#allocation10 + $0x1d8] sm:$0xff] }
 0x50e   :  { %1804 = vmatprep.subr.mxu1 %v2143_v2 }
 0x58e   :  { %v608_v28 = vpop.f32.mrf.mxu1 }
 0x58f   :  { %v613_v29 = vmin.f32 %v608_v28, 0.0  ;;  %vm612_vm7 = vcmp.gt.f32.partialorder %v608_v28, 0.0 }
 0x590   :  { %v1693_v30 = vpop.f32.mrf.mxu1 }
 0x591   :  { %v614_v31 = vmul.f32 1.442695, %v613_v29  ;;  %v401_v29 = vld [vmem:[#allocation10 + $0x1c8] sm:$0xff]  ;;  %v400_v30 = vld [vmem:[#allocation10 + $0x1c0] sm:$0xff] }
 0x593   :  { %1981 = vpow2.f32 %v614_v31  ;;  %v399_v31 = vld [vmem:[#allocation10 + $0x1b8] sm:$0xff] }
 0x5a0   :  { %v1982_v32 = vpop.eup %1981 }
 0x5a1   :  { %v1492_v33 = vadd.f32 -1.0, %v1982_v32  ;;  %v398_v32 = vld [vmem:[#allocation10 + $0x1b0] sm:$0xff] }
 0x5a3   :  { %v617_v34 = vsel %vm612_vm7, %v608_v28, %v1492_v33  ;;  %v402_v28 = vld [vmem:[#allocation10 + $0x1d0] sm:$0xff]  ;;  %v397_v33 = vld [vmem:[#allocation10 + $0x1a8] sm:$0xff] }
 0x5a4   :  { %1802 = vmatmul.mubr.f32.vlgmr.msra.gmra.mxu0 %v617_v34  ;;  %v396_v34 = vld [vmem:[#allocation10 + $0x1a0] sm:$0xff] }
 0x5a5   :  { %1876 = vmatprep.mubr.msk.f32.mxu0 %vm2144_vm0, %v2143_v2  ;;  %1845 = vmatpush3.msra.mxu0 %v391_v60  ;;  %v1381_v60 = vld [vmem:[#allocation11 + $0x10] sm:$0xff] }
 0x5a6   :  { %1846 = vmatprep.subr.mxu0 %v2143_v2 }
 0x5a7   :  { %1847 = vmatpush3.msra.mxu0 %v390_v61  ;;  %v1380_v61 = vld [vmem:[#allocation11 + $0x8] sm:$0xff] }
 0x5a8   :  { %1848 = vmatprep.subr.mxu0 %v2143_v2 }
 0x5a9   :  { %1849 = vmatpush3.msra.mxu0 %v389_v62  ;;  %v1379_v62 = vld [vmem:[#allocation11] sm:$0xff] }
 0x5aa   :  { %1850 = vmatprep.subr.mxu0 %v2143_v2 }
 0x5ab   :  { %1851 = vmatpush3.msra.mxu0 %v388_v63 }
 0x5ac   :  { %1852 = vmatprep.subr.mxu0 %v2143_v2 }
 0x5ad   :  { %1853 = vmatpush3.msra.mxu0 %v387_v0 }
 0x5ae   :  { %v817_v35 = vpop.f32.mrf.mxu1  ;;  %1854 = vmatprep.subr.mxu0 %v2143_v2 }
 0x5af   :  { %v822_v36 = vmin.f32 %v817_v35, 0.0  ;;  %vm821_vm8 = vcmp.gt.f32.partialorder %v817_v35, 0.0  ;;  %1855 = vmatpush3.msra.mxu0 %v386_v1 }
 0x5b0   :  { %v1733_v37 = vpop.f32.mrf.mxu1  ;;  %1856 = vmatprep.subr.mxu0 %v2143_v2 }
 0x5b1   :  { %v823_v38 = vmul.f32 1.442695, %v822_v36  ;;  %1857 = vmatpush3.msra.mxu0 %v385_v3  ;;  %v377_v36 = vld [vmem:[#allocation10 + $0x108] sm:$0xff]  ;;  %v394_v37 = vld [vmem:[#allocation10 + $0x190] sm:$0xff] }
 0x5b2   :  { %1858 = vmatprep.subr.mxu0 %v2143_v2 }
 0x5b3   :  { %1983 = vpow2.f32 %v823_v38  ;;  %1859 = vmatpush3.msra.mxu0 %v384_v4  ;;  %v376_v38 = vld [vmem:[#allocation10 + $0x100] sm:$0xff]  ;;  %v1501_v4 = vld [vmem:[%s2656_s11] ss:$0 sm:$0xff] }
 0x5b4   :  { %1860 = vmatprep.subr.mxu0 %v2143_v2 }
 0x5b5   :  { %1861 = vmatpush3.msra.mxu0 %v383_v5 }
 0x5b6   :  { %1862 = vmatprep.subr.mxu0 %v2143_v2 }
 0x5b7   :  { %1863 = vmatpush3.msra.mxu0 %v382_v6 }
 0x5b8   :  { %1864 = vmatprep.subr.mxu0 %v2143_v2 }
 0x5b9   :  { %1865 = vmatpush3.msra.mxu0 %v381_v7 }
 0x5ba   :  { %1866 = vmatprep.subr.mxu0 %v2143_v2 }
 0x5bb   :  { %1867 = vmatpush3.msra.mxu0 %v380_v8 }
 0x5bc   :  { %1868 = vmatprep.subr.mxu0 %v2143_v2 }
 0x5bd   :  { %1869 = vmatpush3.msra.mxu0 %v379_v9 }
 0x5be   :  { %1870 = vmatprep.subr.mxu0 %v2143_v2 }
 0x5bf   :  { %1871 = vmatpush3.msra.mxu0 %v378_v10 }
 0x5c0   :  { %v1984_v39 = vpop.eup %1983  ;;  %1872 = vmatprep.subr.mxu0 %v2143_v2 }
 0x5c1   :  { %v1494_v40 = vadd.f32 -1.0, %v1984_v39  ;;  %1873 = vmatpush3.msra.mxu0 %v377_v36  ;;  %v393_v39 = vld [vmem:[#allocation10 + $0x188] sm:$0xff] }
 0x5c2   :  { %1874 = vmatprep.subr.mxu0 %v2143_v2 }
 0x5c3   :  { %v826_v42 = vsel %vm821_vm8, %v817_v35, %v1494_v40  ;;  %v395_v35 = vld [vmem:[#allocation10 + $0x198] sm:$0xff]  ;;  %1875 = vmatpush3.msra.mxu0 %v376_v38  ;;  %v392_v40 = vld [vmem:[#allocation10 + $0x180] sm:$0xff] }
 0x5c4   :  { %1767 = vmatmul.mubr.f32.vlgmr.msra.gmra.mxu1 %v826_v42  ;;  %1919 = vmatprep.subr.mxu0 %v2143_v2 }
 0x5c5   :  { %1805 = vmatpush3.msk.msra.mxu1 %vm980_vm9, %v968_v41  ;;  %1806 = vmatprep.mubr.msk.f32.mxu1 %vm2144_vm0, %v2143_v2  ;;  %v1498_v41 = vld [vmem:[%s2653_s8] ss:$0 sm:$0xff] }
 0x5c6   :  { %1809 = vmatprep.subr.mxu1 %v2143_v2 }
 0x5c8   :  { %1807 = vmatmul.mubr.msk.f32.vlgmr.msra.gmra.mxu1 %vm976_vm10, %v967_v43 }
 0x5c9   :  { %1841 = vmatprep.mubr.msk.f32.mxu1 %vm2144_vm0, %v2143_v2  ;;  %1810 = vmatpush3.msra.mxu1 %v1070_v44  ;;  %v1394_v44 = vld [vmem:[#allocation11 + $0x78] sm:$0xff] }
 0x5ca   :  { %1811 = vmatprep.subr.mxu1 %v2143_v2 }
 0x5cb   :  { %1812 = vmatpush3.msra.mxu1 %v1069_v45 }
 0x5cc   :  { %1813 = vmatprep.subr.mxu1 %v2143_v2 }
 0x5cd   :  { %1814 = vmatpush3.msra.mxu1 %v1068_v46  ;;  %v1393_v46 = vld [vmem:[#allocation11 + $0x70] sm:$0xff] }
 0x5ce   :  { %1815 = vmatprep.subr.mxu1 %v2143_v2 }
 0x5cf   :  { %1816 = vmatpush3.msra.mxu1 %v1067_v47 }
 0x5d0   :  { %1817 = vmatprep.subr.mxu1 %v2143_v2 }
 0x5d1   :  { %1818 = vmatpush3.msra.mxu1 %v1066_v48  ;;  %v1392_v48 = vld [vmem:[#allocation11 + $0x68] sm:$0xff] }
 0x5d2   :  { %1819 = vmatprep.subr.mxu1 %v2143_v2 }
 0x5d3   :  { %1820 = vmatpush3.msra.mxu1 %v1065_v49 }
 0x5d4   :  { %1821 = vmatprep.subr.mxu1 %v2143_v2 }
 0x5d5   :  { %1822 = vmatpush3.msra.mxu1 %v1064_v50  ;;  %v1391_v50 = vld [vmem:[#allocation11 + $0x60] sm:$0xff] }
 0x5d6   :  { %1823 = vmatprep.subr.mxu1 %v2143_v2 }
 0x5d7   :  { %1824 = vmatpush3.msra.mxu1 %v1063_v51  ;;  %v1390_v51 = vld [vmem:[#allocation11 + $0x58] sm:$0xff] }
 0x5d8   :  { %1825 = vmatprep.subr.mxu1 %v2143_v2 }
 0x5d9   :  { %1826 = vmatpush3.msra.mxu1 %v1062_v52  ;;  %v1389_v52 = vld [vmem:[#allocation11 + $0x50] sm:$0xff] }
 0x5da   :  { %1827 = vmatprep.subr.mxu1 %v2143_v2 }
 0x5db   :  { %1828 = vmatpush3.msra.mxu1 %v1061_v53  ;;  %v1388_v53 = vld [vmem:[#allocation11 + $0x48] sm:$0xff] }
 0x5dc   :  { %1829 = vmatprep.subr.mxu1 %v2143_v2 }
 0x5dd   :  { %1830 = vmatpush3.msra.mxu1 %v1060_v54  ;;  %v1387_v54 = vld [vmem:[#allocation11 + $0x40] sm:$0xff] }
 0x5de   :  { %1831 = vmatprep.subr.mxu1 %v2143_v2 }
 0x5df   :  { %1832 = vmatpush3.msra.mxu1 %v1059_v55  ;;  %v1386_v55 = vld [vmem:[#allocation11 + $0x38] sm:$0xff] }
 0x5e0   :  { %1833 = vmatprep.subr.mxu1 %v2143_v2 }
 0x5e1   :  { %1834 = vmatpush3.msra.mxu1 %v1058_v56  ;;  %v1385_v56 = vld [vmem:[#allocation11 + $0x30] sm:$0xff] }
 0x5e2   :  { %1835 = vmatprep.subr.mxu1 %v2143_v2 }
 0x5e3   :  { %1836 = vmatpush3.msra.mxu1 %v1057_v57  ;;  %v1384_v57 = vld [vmem:[#allocation11 + $0x28] sm:$0xff] }
 0x5e4   :  { %1837 = vmatprep.subr.mxu1 %v2143_v2 }
 0x5e5   :  { %1838 = vmatpush3.msra.mxu1 %v1056_v58  ;;  %v1383_v58 = vld [vmem:[#allocation11 + $0x20] sm:$0xff] }
 0x5e6   :  { %1839 = vmatprep.subr.mxu1 %v2143_v2 }
 0x5e7   :  { %1840 = vmatpush3.msra.mxu1 %v1055_v59  ;;  %v1382_v59 = vld [vmem:[#allocation11 + $0x18] sm:$0xff] }
 0x5e8   :  { %1879 = vmatprep.subr.mxu1 %v2143_v2 }
 0x664   :  { %v963_v11 = vpop.f32.mrf.mxu0 }
 0x666   :  { %v1803_v12 = vpop.f32.mrf.mxu0 }
 0x684   :  { %v893_v13 = vpop.f32.mrf.mxu1 }
 0x685   :  { %v2585_v14 = vadd.f32 %v963_v11, %v893_v13 }
 0x686   :  { %v1768_v15 = vpop.f32.mrf.mxu1 }
 0x688   :  { %v1050_v17 = vpop.f32.mrf.mxu1 }
 0x689   :  { %v1051_v18 = vadd.f32 %v1495_v16, %v1050_v17 }
 0x68a   :  { %v1808_v19 = vpop.f32.mrf.mxu1 }
 0x68b   :  { %v1054_v20 = vmax.f32 %v1051_v18, 0.0 }
 0x68d   :  { %1842 = vmatmul.mubr.f32.vlgmr.msra.gmra.mxu1 %v1054_v20 }
 0x68e   :  { %1880 = vmatpush3.msk.msra.mxu1 %vm1225_vm11, %v1220_v21  ;;  %1881 = vmatprep.mubr.msk.f32.mxu1 %vm2144_vm0, %v2143_v2 }
 0x68f   :  { %1884 = vmatprep.subr.mxu1 %v2143_v2 }
 0x691   :  { %1882 = vmatmul.mubr.msk.f32.vlgmr.msra.gmra.mxu1 %vm1221_vm12, %v1219_v22 }
 0x692   :  { %1885 = vmatpush3.msra.mxu1 %v407_v23  ;;  %1916 = vmatprep.mubr.msk.f32.mxu1 %vm2144_vm0, %v2143_v2 }
 0x693   :  { %1886 = vmatprep.subr.mxu1 %v2143_v2 }
 0x694   :  { %1887 = vmatpush3.msra.mxu1 %v406_v24 }
 0x695   :  { %1888 = vmatprep.subr.mxu1 %v2143_v2 }
 0x696   :  { %1889 = vmatpush3.msra.mxu1 %v405_v25 }
 0x697   :  { %1890 = vmatprep.subr.mxu1 %v2143_v2 }
 0x698   :  { %1891 = vmatpush3.msra.mxu1 %v404_v26 }
 0x699   :  { %1892 = vmatprep.subr.mxu1 %v2143_v2 }
 0x69a   :  { %1893 = vmatpush3.msra.mxu1 %v403_v27 }
 0x69b   :  { %1894 = vmatprep.subr.mxu1 %v2143_v2 }
 0x69c   :  { %1895 = vmatpush3.msra.mxu1 %v402_v28 }
 0x69d   :  { %1896 = vmatprep.subr.mxu1 %v2143_v2 }
 0x69e   :  { %1897 = vmatpush3.msra.mxu1 %v401_v29 }
 0x69f   :  { %1898 = vmatprep.subr.mxu1 %v2143_v2 }
 0x6a0   :  { %1899 = vmatpush3.msra.mxu1 %v400_v30 }
 0x6a1   :  { %1900 = vmatprep.subr.mxu1 %v2143_v2 }
 0x6a2   :  { %1901 = vmatpush3.msra.mxu1 %v399_v31 }
 0x6a3   :  { %1902 = vmatprep.subr.mxu1 %v2143_v2 }
 0x6a4   :  { %1903 = vmatpush3.msra.mxu1 %v398_v32 }
 0x6a5   :  { %1904 = vmatprep.subr.mxu1 %v2143_v2 }
 0x6a6   :  { %1905 = vmatpush3.msra.mxu1 %v397_v33 }
 0x6a7   :  { %1906 = vmatprep.subr.mxu1 %v2143_v2 }
 0x6a8   :  { %1907 = vmatpush3.msra.mxu1 %v396_v34 }
 0x6a9   :  { %1908 = vmatprep.subr.mxu1 %v2143_v2 }
 0x6aa   :  { %1909 = vmatpush3.msra.mxu1 %v395_v35 }
 0x6ab   :  { %1910 = vmatprep.subr.mxu1 %v2143_v2 }
 0x6ac   :  { %1911 = vmatpush3.msra.mxu1 %v394_v37 }
 0x6ad   :  { %1912 = vmatprep.subr.mxu1 %v2143_v2 }
 0x6ae   :  { %1913 = vmatpush3.msra.mxu1 %v393_v39 }
 0x6af   :  { %1914 = vmatprep.subr.mxu1 %v2143_v2 }
 0x6b0   :  { %1915 = vmatpush3.msra.mxu1 %v392_v40 }
 0x74d   :  { %v1144_v42 = vpop.f32.mrf.mxu1 }
 0x74e   :  { %v1145_v43 = vadd.f32 %v1498_v41, %v1144_v42 }
 0x74f   :  { %v1843_v45 = vpop.f32.mrf.mxu1 }
 0x750   :  { %1877 = vmatmul.mubr.f32.vlgmr.msra.gmra.mxu0 %v1145_v43 }
 0x751   :  { %v1295_v47 = vpop.f32.mrf.mxu1  ;;  %1920 = vmatpush3.msra.mxu0 %v1394_v44  ;;  %1951 = vmatprep.mubr.msk.f32.mxu0 %vm2144_vm0, %v2143_v2 }
 0x752   :  { %1917 = vmatmul.mubr.f32.vlgmr.msra.gmra.mxu1 %v1295_v47  ;;  %1921 = vmatprep.subr.mxu0 %v2143_v2 }
 0x753   :  { %v1883_v49 = vpop.f32.mrf.mxu1  ;;  %1922 = vmatpush3.msra.mxu0 %v1393_v46 }
 0x754   :  { %1923 = vmatprep.subr.mxu0 %v2143_v2 }
 0x755   :  { %1924 = vmatpush3.msra.mxu0 %v1392_v48 }
 0x756   :  { %1925 = vmatprep.subr.mxu0 %v2143_v2 }
 0x757   :  { %1926 = vmatpush3.msra.mxu0 %v1391_v50 }
 0x758   :  { %1927 = vmatprep.subr.mxu0 %v2143_v2 }
 0x759   :  { %1928 = vmatpush3.msra.mxu0 %v1390_v51 }
 0x75a   :  { %1929 = vmatprep.subr.mxu0 %v2143_v2 }
 0x75b   :  { %1930 = vmatpush3.msra.mxu0 %v1389_v52 }
 0x75c   :  { %1931 = vmatprep.subr.mxu0 %v2143_v2 }
 0x75d   :  { %1932 = vmatpush3.msra.mxu0 %v1388_v53 }
 0x75e   :  { %1933 = vmatprep.subr.mxu0 %v2143_v2 }
 0x75f   :  { %1934 = vmatpush3.msra.mxu0 %v1387_v54 }
 0x760   :  { %1935 = vmatprep.subr.mxu0 %v2143_v2 }
 0x761   :  { %1936 = vmatpush3.msra.mxu0 %v1386_v55 }
 0x762   :  { %1937 = vmatprep.subr.mxu0 %v2143_v2 }
 0x763   :  { %1938 = vmatpush3.msra.mxu0 %v1385_v56 }
 0x764   :  { %1939 = vmatprep.subr.mxu0 %v2143_v2 }
 0x765   :  { %1940 = vmatpush3.msra.mxu0 %v1384_v57 }
 0x766   :  { %1941 = vmatprep.subr.mxu0 %v2143_v2 }
 0x767   :  { %1942 = vmatpush3.msra.mxu0 %v1383_v58 }
 0x768   :  { %1943 = vmatprep.subr.mxu0 %v2143_v2 }
 0x769   :  { %1944 = vmatpush3.msra.mxu0 %v1382_v59 }
 0x76a   :  { %1945 = vmatprep.subr.mxu0 %v2143_v2 }
 0x76b   :  { %1946 = vmatpush3.msra.mxu0 %v1381_v60 }
 0x76c   :  { %1947 = vmatprep.subr.mxu0 %v2143_v2 }
 0x76d   :  { %1948 = vmatpush3.msra.mxu0 %v1380_v61 }
 0x76e   :  { %1949 = vmatprep.subr.mxu0 %v2143_v2  ;;  %v1502_v2 = vld [vmem:[%s2658_s13] ss:$0 sm:$0xff] }
 0x76f   :  { %1950 = vmatpush3.msra.mxu0 %v1379_v62 }
 0x810   :  { %v1214_v63 = vpop.f32.mrf.mxu0 }
 0x811   :  { %v1218_v0 = vadd.f32 %v1214_v63, %v2585_v14 }
 0x812   :  { %v1878_v1 = vpop.f32.mrf.mxu0  ;;  %v1365_v3 = vpop.f32.mrf.mxu1 }
 0x813   :  { %v1369_v5 = vadd.f32 %v1365_v3, %v1218_v0 }
 0x814   :  { %v1918_v6 = vpop.f32.mrf.mxu1 }
 0x815   :  { %v1377_v7 = vadd.f32 %v1501_v4, %v1369_v5 }
 0x817   :  { %v1378_v8 = vmax.f32 %v1377_v7, 0.0 }
 0x819   :  { %1952 = vmatmul.mubr.f32.vlgmr.msra.gmra.mxu0 %v1378_v8 }
 0x8d9   :  { %v1468_v9 = vpop.f32.mrf.mxu0 }
 0x8da   :  { %v1469_v10 = vadd.f32 %v1502_v2, %v1468_v9 }
 0x8db   :  { %v1953_v11 = vpop.f32.mrf.mxu0 }
 0x8dc   :  { %1472 = vst [vmem:[#allocation13] sm:$0xff] %v1469_v10 }
 0x8dd   :  { %2116 = shalt.err (!%p2113_p6)
}
 0x8de   :  { %1482 = dma.vmem_to_hbm [thread:$0]  %s1480_s5, 128, %s2659_s14, [#allocation4]  }
 0x8df   :  { %2133 = dma.done.wait [#allocation4], 128  }
 0x8e0   :  { %2134 = vsyncadd [#allocation4], 4294967168 }
 0x8e1   :  { %1486 = vsyncpa [#allocation3], 1 }
 0x8e2   :  { %1487 = vsyncpa [#allocation6], 1 }
 0x8e3   :  { %1488 = vsyncpa [#allocation9], 1 }
 0x8e4   :  { %1489 = vsyncpa [#allocation12], 1 }
 0x8e5   :  { %1490 = vsyncpa [#allocation4], 1 }

</bundles_post_ra>
